<compile_context>
chip_gen: v6e
topology: v6e:2x2x1
jax: 0.10.0
libtpu: 0.0.40
codegen_flags: <defaults>
</compile_context>

<pallas_src>
import functools

import jax
import jax.numpy as jnp
from jax.experimental import pallas as pl
from jax.experimental.pallas import tpu as pltpu


# ----------------------------- Pallas kernel ------------------------------ #

def _make_kernel(H, W, out_w=11):
    """Kernel processing ONE batch element per grid step."""

    def kernel(x_ref, w1_ref, w2_ref, w3_ref,
               bs1_ref, bo1_ref, w4_ref, bs2_ref, bo2_ref,
               w5_ref, bs3_ref, bo3_ref, w6_ref, bs4_ref, bo4_ref,
               fw1_ref, fb1_ref, lg_ref, lb_ref, fw2_ref, fb2_ref,
               out_ref):
        f32 = jnp.float32
        bf16 = jnp.bfloat16
        relu = lambda v: jnp.maximum(v, 0.0)

        def mm(a, w_ref):
            # bf16 x bf16 MXU matmul, f32 accumulation.
            return jnp.dot(a.astype(bf16), w_ref[...], preferred_element_type=f32)

        # ---- conv1: three 1x1 convs + ReLU ------------------------------- #
        x = x_ref[0]                                   # (C, H*W) f32, channels on sublanes
        h = jnp.dot(w1_ref[...], x.astype(bf16),       # (128, C) @ (C, H*W)
                    preferred_element_type=f32)        # -> (128, H*W)
        h = relu(h).T                                  # aligned transpose -> (H*W, 128)
        h = relu(mm(h, w2_ref))                        # (H*W, 160)
        h = relu(mm(h, w3_ref))                        # (H*W, 128)

        # ---- pool1: AdaptiveAvgPool2d((1, out_w)) as in-kernel reductions - #
        # rows of h are ordered h-major, w-minor: row = hh*W + ww
        colsum = h[0:W, :]
        for hh in range(1, H):
            colsum = colsum + h[hh * W:(hh + 1) * W, :]
        colmean = colsum * (1.0 / H)                   # (W, 128): mean over H
        rows = []
        for j in range(out_w):                         # static adaptive windows over W
            ws = (j * W) // out_w
            we = -(-((j + 1) * W) // out_w)            # ceil((j+1)*W / out_w)
            rows.append(jnp.mean(colmean[ws:we, :], axis=0, keepdims=True))
        p = jnp.concatenate(rows, axis=0)              # (out_w, 128)

        # ---- conv2: BN -> conv -> ReLU (x3) -> BN (eval-mode folded BN) --- #
        p = p * bs1_ref[...] + bo1_ref[...]            # BatchNorm2d(128)
        p = relu(mm(p, w4_ref))                        # (out_w, 160)
        p = p * bs2_ref[...] + bo2_ref[...]            # BatchNorm2d(160)
        p = relu(mm(p, w5_ref))                        # (out_w, 96)
        p = p * bs3_ref[...] + bo3_ref[...]            # BatchNorm2d(96)
        p = relu(mm(p, w6_ref))                        # (out_w, 96)
        p = p * bs4_ref[...] + bo4_ref[...]            # BatchNorm2d(96)

        # ---- pool2: AdaptiveAvgPool2d((1,1)) + Flatten -------------------- #
        feat = jnp.mean(p, axis=0, keepdims=True)      # (1, 96)

        # ---- head: Linear -> LayerNorm -> ReLU -> [Dropout: eval id] -> Linear
        z = mm(feat, fw1_ref) + fb1_ref[...]           # (1, 256)
        mu = jnp.mean(z, axis=-1, keepdims=True)
        var = jnp.mean((z - mu) ** 2, axis=-1, keepdims=True)
        z = (z - mu) * jax.lax.rsqrt(var + 1e-5) * lg_ref[...] + lb_ref[...]
        z = relu(z)
        out_ref[0] = mm(z, fw2_ref) + fb2_ref[...]     # (1, NC_PAD) lane-dense store

    return kernel


# ------------------------------ parameters -------------------------------- #

def _fold_bn(gamma, beta, mean, var, eps=1e-5):
    scale = gamma / jnp.sqrt(var + eps)
    shift = beta - mean * scale
    return (scale.reshape(1, -1).astype(jnp.float32),
            shift.reshape(1, -1).astype(jnp.float32))


def init_params(key, num_classes):
    """Random 'PyTorch-like' parameters (1x1 conv weights stored as (Cin, Cout))."""
    ks = iter(jax.random.split(key, 40))
    nrm = lambda shape, s: jax.random.normal(next(ks), shape, jnp.float32) * s

    p = {}
    p["w1"] = nrm((10, 128), 0.2)
    p["w2"] = nrm((128, 160), 0.08)
    p["w3"] = nrm((160, 128), 0.08)
    p["w4"] = nrm((128, 160), 0.08)
    p["w5"] = nrm((160, 96), 0.08)
    p["w6"] = nrm((96, 96), 0.1)
    for name, c in (("bn1", 128), ("bn2", 160), ("bn3", 96), ("bn4", 96)):
        p[name] = dict(gamma=1.0 + nrm((c,), 0.1), beta=nrm((c,), 0.1),
                       mean=nrm((c,), 0.1), var=1.0 + jnp.abs(nrm((c,), 0.1)))
    p["fc1_w"] = nrm((96, 256), 0.1)
    p["fc1_b"] = nrm((256,), 0.05)
    p["ln_g"] = 1.0 + nrm((256,), 0.05)
    p["ln_b"] = nrm((256,), 0.05)
    p["fc2_w"] = nrm((256, num_classes), 0.1)
    p["fc2_b"] = nrm((num_classes,), 0.05)
    return p


def prepare_params(p, num_classes):
    """One-time conversion to kernel layout: fold BN, bf16 matmul weights,
    transpose w1, pad the classifier to a lane-dense width."""
    bf16 = jnp.bfloat16
    nc_pad = max(128, ((num_classes + 127) // 128) * 128)

    kp = {}
    kp["w1t"] = jnp.transpose(p["w1"]).astype(bf16)          # (128, 10)
    for k in ("w2", "w3", "w4", "w5", "w6"):
        kp[k] = p[k].astype(bf16)
    for k in ("bn1", "bn2", "bn3", "bn4"):
        kp[k + "_s"], kp[k + "_o"] = _fold_bn(**p[k])
    kp["fc1_w"] = p["fc1_w"].astype(bf16)
    kp["fc1_b"] = p["fc1_b"].reshape(1, -1)
    kp["ln_g"] = p["ln_g"].reshape(1, -1)
    kp["ln_b"] = p["ln_b"].reshape(1, -1)
    fc2_w = jnp.zeros((256, nc_pad), jnp.float32).at[:, :num_classes].set(p["fc2_w"])
    fc2_b = jnp.zeros((1, nc_pad), jnp.float32).at[0, :num_classes].set(p["fc2_b"])
    kp["fc2_w"] = fc2_w.astype(bf16)
    kp["fc2_b"] = fc2_b
    return kp


# ------------------------------- wrapper ----------------------------------- #

def _full_spec(a):
    nd = a.ndim
    return pl.BlockSpec(a.shape, lambda b, _nd=nd: (0,) * _nd)


@functools.partial(jax.jit, static_argnames=("num_classes",))
def cnn_forward(x_nchw, kp, *, num_classes):
    """Forward pass of CnnModel (eval mode). x: (B, 10, H, W) f32 -> (B, num_classes)."""
    B, C, H, W = x_nchw.shape
    x3 = x_nchw.reshape(B, C, H * W)          # free reshape, no transpose
    nc_pad = kp["fc2_w"].shape[1]

    args = (
        x3, kp["w1t"], kp["w2"], kp["w3"],
        kp["bn1_s"], kp["bn1_o"], kp["w4"],
        kp["bn2_s"], kp["bn2_o"], kp["w5"],
        kp["bn3_s"], kp["bn3_o"], kp["w6"],
        kp["bn4_s"], kp["bn4_o"],
        kp["fc1_w"], kp["fc1_b"], kp["ln_g"], kp["ln_b"],
        kp["fc2_w"], kp["fc2_b"],
    )
    in_specs = ([pl.BlockSpec((1, C, H * W), lambda b: (b, 0, 0))]
                + [_full_spec(a) for a in args[1:]])

    out = pl.pallas_call(
        _make_kernel(H, W),
        grid=(B,),                                      # one sample per grid step
        in_specs=in_specs,
        out_specs=pl.BlockSpec((1, 1, nc_pad), lambda b: (b, 0, 0)),
        out_shape=jax.ShapeDtypeStruct((B, 1, nc_pad), jnp.float32),
        compiler_params=pltpu.CompilerParams(dimension_semantics=("parallel",)),
    )(*args)

    return out[:, 0, :num_classes]                      # drop lane padding


# --------------------------------- main ------------------------------------ #

if __name__ == "__main__":
    key = jax.random.PRNGKey(0)
    k_x, k_p = jax.random.split(key)

    B, C, H, W = 2, 10, 16, 16
    num_classes = 8

    x = jax.random.normal(k_x, (B, C, H, W), jnp.float32)
    raw_params = init_params(k_p, num_classes)
    kparams = prepare_params(raw_params, num_classes)   # one-time, outside hot path

    out = cnn_forward(x, kparams, num_classes=num_classes)
    out = jax.block_until_ready(out)

    assert out.shape == (B, num_classes)
    assert bool(jnp.all(jnp.isfinite(out)))
    print("KERNEL_OK")
</pallas_src>

<mosaic_0001>
module attributes {stable_mosaic.version = 11 : i64} {
  func.func @kernel(%arg0: i32, %arg1: memref<1x10x256xf32, #tpu.memory_space<vmem>>, %arg2: memref<128x10xbf16, #tpu.memory_space<vmem>>, %arg3: memref<128x160xbf16, #tpu.memory_space<vmem>>, %arg4: memref<160x128xbf16, #tpu.memory_space<vmem>>, %arg5: memref<1x128xf32, #tpu.memory_space<vmem>>, %arg6: memref<1x128xf32, #tpu.memory_space<vmem>>, %arg7: memref<128x160xbf16, #tpu.memory_space<vmem>>, %arg8: memref<1x160xf32, #tpu.memory_space<vmem>>, %arg9: memref<1x160xf32, #tpu.memory_space<vmem>>, %arg10: memref<160x96xbf16, #tpu.memory_space<vmem>>, %arg11: memref<1x96xf32, #tpu.memory_space<vmem>>, %arg12: memref<1x96xf32, #tpu.memory_space<vmem>>, %arg13: memref<96x96xbf16, #tpu.memory_space<vmem>>, %arg14: memref<1x96xf32, #tpu.memory_space<vmem>>, %arg15: memref<1x96xf32, #tpu.memory_space<vmem>>, %arg16: memref<96x256xbf16, #tpu.memory_space<vmem>>, %arg17: memref<1x256xf32, #tpu.memory_space<vmem>>, %arg18: memref<1x256xf32, #tpu.memory_space<vmem>>, %arg19: memref<1x256xf32, #tpu.memory_space<vmem>>, %arg20: memref<256x128xbf16, #tpu.memory_space<vmem>>, %arg21: memref<1x128xf32, #tpu.memory_space<vmem>>, %arg22: memref<1x1x128xf32, #tpu.memory_space<vmem>>) attributes {dimension_semantics = [#tpu.dimension_semantics<parallel>], iteration_bounds = array<i64: 2>, scalar_prefetch = 0 : i64, scratch_operands = 0 : i64, tpu.core_type = #tpu.core_type<tc>, window_params = [{transform_indices = @transform_0, window_bounds = array<i64: 1, 10, 256>}, {pipeline_mode = #tpu.pipeline_mode<synchronous>, transform_indices = @transform_1, window_bounds = array<i64: 128, 10>}, {pipeline_mode = #tpu.pipeline_mode<synchronous>, transform_indices = @transform_2, window_bounds = array<i64: 128, 160>}, {pipeline_mode = #tpu.pipeline_mode<synchronous>, transform_indices = @transform_3, window_bounds = array<i64: 160, 128>}, {pipeline_mode = #tpu.pipeline_mode<synchronous>, transform_indices = @transform_4, window_bounds = array<i64: 1, 128>}, {pipeline_mode = #tpu.pipeline_mode<synchronous>, transform_indices = @transform_5, window_bounds = array<i64: 1, 128>}, {pipeline_mode = #tpu.pipeline_mode<synchronous>, transform_indices = @transform_6, window_bounds = array<i64: 128, 160>}, {pipeline_mode = #tpu.pipeline_mode<synchronous>, transform_indices = @transform_7, window_bounds = array<i64: 1, 160>}, {pipeline_mode = #tpu.pipeline_mode<synchronous>, transform_indices = @transform_8, window_bounds = array<i64: 1, 160>}, {pipeline_mode = #tpu.pipeline_mode<synchronous>, transform_indices = @transform_9, window_bounds = array<i64: 160, 96>}, {pipeline_mode = #tpu.pipeline_mode<synchronous>, transform_indices = @transform_10, window_bounds = array<i64: 1, 96>}, {pipeline_mode = #tpu.pipeline_mode<synchronous>, transform_indices = @transform_11, window_bounds = array<i64: 1, 96>}, {pipeline_mode = #tpu.pipeline_mode<synchronous>, transform_indices = @transform_12, window_bounds = array<i64: 96, 96>}, {pipeline_mode = #tpu.pipeline_mode<synchronous>, transform_indices = @transform_13, window_bounds = array<i64: 1, 96>}, {pipeline_mode = #tpu.pipeline_mode<synchronous>, transform_indices = @transform_14, window_bounds = array<i64: 1, 96>}, {pipeline_mode = #tpu.pipeline_mode<synchronous>, transform_indices = @transform_15, window_bounds = array<i64: 96, 256>}, {pipeline_mode = #tpu.pipeline_mode<synchronous>, transform_indices = @transform_16, window_bounds = array<i64: 1, 256>}, {pipeline_mode = #tpu.pipeline_mode<synchronous>, transform_indices = @transform_17, window_bounds = array<i64: 1, 256>}, {pipeline_mode = #tpu.pipeline_mode<synchronous>, transform_indices = @transform_18, window_bounds = array<i64: 1, 256>}, {pipeline_mode = #tpu.pipeline_mode<synchronous>, transform_indices = @transform_19, window_bounds = array<i64: 256, 128>}, {pipeline_mode = #tpu.pipeline_mode<synchronous>, transform_indices = @transform_20, window_bounds = array<i64: 1, 128>}, {transform_indices = @transform_21, window_bounds = array<i64: 1, 1, 128>}]} {
    %c0 = arith.constant 0 : index
    %c0_0 = arith.constant 0 : index
    %c0_1 = arith.constant 0 : index
    %0 = vector.load %arg1[%c0, %c0_0, %c0_1] : memref<1x10x256xf32, #tpu.memory_space<vmem>>, vector<1x10x256xf32>
    %1 = vector.shape_cast %0 : vector<1x10x256xf32> to vector<10x256xf32>
    %c0_2 = arith.constant 0 : index
    %c0_3 = arith.constant 0 : index
    %2 = vector.load %arg2[%c0_2, %c0_3] : memref<128x10xbf16, #tpu.memory_space<vmem>>, vector<128x10xbf16>
    %3 = arith.truncf %1 : vector<10x256xf32> to vector<10x256xbf16>
    %cst = arith.constant dense<0.000000e+00> : vector<128x256xf32>
    %4 = tpu.matmul %2, %3, %cst {dimension_numbers = #tpu.dot_dimension_numbers<[1], [0], [0], [1], [0, 0, 1, 1], [], []>} : vector<128x10xbf16>, vector<10x256xbf16>, vector<128x256xf32> -> vector<128x256xf32>
    %cst_4 = arith.constant 0.000000e+00 : f32
    %5 = vector.broadcast %cst_4 : f32 to vector<128x256xf32>
    %6 = arith.maximumf %4, %5 : vector<128x256xf32>
    %7 = tpu.transpose %6, [1, 0] : vector<128x256xf32> -> vector<256x128xf32>
    %8 = arith.truncf %7 : vector<256x128xf32> to vector<256x128xbf16>
    %c0_5 = arith.constant 0 : index
    %c0_6 = arith.constant 0 : index
    %9 = vector.load %arg3[%c0_5, %c0_6] : memref<128x160xbf16, #tpu.memory_space<vmem>>, vector<128x160xbf16>
    %cst_7 = arith.constant dense<0.000000e+00> : vector<256x160xf32>
    %10 = tpu.matmul %8, %9, %cst_7 {dimension_numbers = #tpu.dot_dimension_numbers<[1], [0], [0], [1], [0, 0, 1, 1], [], []>} : vector<256x128xbf16>, vector<128x160xbf16>, vector<256x160xf32> -> vector<256x160xf32>
    %cst_8 = arith.constant 0.000000e+00 : f32
    %11 = vector.broadcast %cst_8 : f32 to vector<256x160xf32>
    %12 = arith.maximumf %10, %11 : vector<256x160xf32>
    %13 = arith.truncf %12 : vector<256x160xf32> to vector<256x160xbf16>
    %c0_9 = arith.constant 0 : index
    %c0_10 = arith.constant 0 : index
    %14 = vector.load %arg4[%c0_9, %c0_10] : memref<160x128xbf16, #tpu.memory_space<vmem>>, vector<160x128xbf16>
    %cst_11 = arith.constant dense<0.000000e+00> : vector<256x128xf32>
    %15 = tpu.matmul %13, %14, %cst_11 {dimension_numbers = #tpu.dot_dimension_numbers<[1], [0], [0], [1], [0, 0, 1, 1], [], []>} : vector<256x160xbf16>, vector<160x128xbf16>, vector<256x128xf32> -> vector<256x128xf32>
    %cst_12 = arith.constant 0.000000e+00 : f32
    %16 = vector.broadcast %cst_12 : f32 to vector<256x128xf32>
    %17 = arith.maximumf %15, %16 : vector<256x128xf32>
    %18 = vector.extract_strided_slice %17 {offsets = [0, 0], sizes = [16, 128], strides = [1, 1]} : vector<256x128xf32> to vector<16x128xf32>
    %19 = vector.extract_strided_slice %17 {offsets = [16, 0], sizes = [16, 128], strides = [1, 1]} : vector<256x128xf32> to vector<16x128xf32>
    %20 = arith.addf %18, %19 : vector<16x128xf32>
    %21 = vector.extract_strided_slice %17 {offsets = [32, 0], sizes = [16, 128], strides = [1, 1]} : vector<256x128xf32> to vector<16x128xf32>
    %22 = arith.addf %20, %21 : vector<16x128xf32>
    %23 = vector.extract_strided_slice %17 {offsets = [48, 0], sizes = [16, 128], strides = [1, 1]} : vector<256x128xf32> to vector<16x128xf32>
    %24 = arith.addf %22, %23 : vector<16x128xf32>
    %25 = vector.extract_strided_slice %17 {offsets = [64, 0], sizes = [16, 128], strides = [1, 1]} : vector<256x128xf32> to vector<16x128xf32>
    %26 = arith.addf %24, %25 : vector<16x128xf32>
    %27 = vector.extract_strided_slice %17 {offsets = [80, 0], sizes = [16, 128], strides = [1, 1]} : vector<256x128xf32> to vector<16x128xf32>
    %28 = arith.addf %26, %27 : vector<16x128xf32>
    %29 = vector.extract_strided_slice %17 {offsets = [96, 0], sizes = [16, 128], strides = [1, 1]} : vector<256x128xf32> to vector<16x128xf32>
    %30 = arith.addf %28, %29 : vector<16x128xf32>
    %31 = vector.extract_strided_slice %17 {offsets = [112, 0], sizes = [16, 128], strides = [1, 1]} : vector<256x128xf32> to vector<16x128xf32>
    %32 = arith.addf %30, %31 : vector<16x128xf32>
    %33 = vector.extract_strided_slice %17 {offsets = [128, 0], sizes = [16, 128], strides = [1, 1]} : vector<256x128xf32> to vector<16x128xf32>
    %34 = arith.addf %32, %33 : vector<16x128xf32>
    %35 = vector.extract_strided_slice %17 {offsets = [144, 0], sizes = [16, 128], strides = [1, 1]} : vector<256x128xf32> to vector<16x128xf32>
    %36 = arith.addf %34, %35 : vector<16x128xf32>
    %37 = vector.extract_strided_slice %17 {offsets = [160, 0], sizes = [16, 128], strides = [1, 1]} : vector<256x128xf32> to vector<16x128xf32>
    %38 = arith.addf %36, %37 : vector<16x128xf32>
    %39 = vector.extract_strided_slice %17 {offsets = [176, 0], sizes = [16, 128], strides = [1, 1]} : vector<256x128xf32> to vector<16x128xf32>
    %40 = arith.addf %38, %39 : vector<16x128xf32>
    %41 = vector.extract_strided_slice %17 {offsets = [192, 0], sizes = [16, 128], strides = [1, 1]} : vector<256x128xf32> to vector<16x128xf32>
    %42 = arith.addf %40, %41 : vector<16x128xf32>
    %43 = vector.extract_strided_slice %17 {offsets = [208, 0], sizes = [16, 128], strides = [1, 1]} : vector<256x128xf32> to vector<16x128xf32>
    %44 = arith.addf %42, %43 : vector<16x128xf32>
    %45 = vector.extract_strided_slice %17 {offsets = [224, 0], sizes = [16, 128], strides = [1, 1]} : vector<256x128xf32> to vector<16x128xf32>
    %46 = arith.addf %44, %45 : vector<16x128xf32>
    %47 = vector.extract_strided_slice %17 {offsets = [240, 0], sizes = [16, 128], strides = [1, 1]} : vector<256x128xf32> to vector<16x128xf32>
    %48 = arith.addf %46, %47 : vector<16x128xf32>
    %cst_13 = arith.constant 6.250000e-02 : f32
    %49 = vector.broadcast %cst_13 : f32 to vector<16x128xf32>
    %50 = arith.mulf %48, %49 : vector<16x128xf32>
    %51 = vector.extract_strided_slice %50 {offsets = [0, 0], sizes = [2, 128], strides = [1, 1]} : vector<16x128xf32> to vector<2x128xf32>
    %cst_14 = arith.constant dense<0.000000e+00> : vector<128xf32>
    %52 = vector.multi_reduction <add>, %51, %cst_14 [0] : vector<2x128xf32> to vector<128xf32>
    %53 = vector.shape_cast %52 : vector<128xf32> to vector<1x128xf32>
    %cst_15 = arith.constant 2.000000e+00 : f32
    %54 = vector.broadcast %cst_15 : f32 to vector<1x128xf32>
    %55 = arith.divf %53, %54 : vector<1x128xf32>
    %56 = vector.extract_strided_slice %50 {offsets = [1, 0], sizes = [2, 128], strides = [1, 1]} : vector<16x128xf32> to vector<2x128xf32>
    %cst_16 = arith.constant dense<0.000000e+00> : vector<128xf32>
    %57 = vector.multi_reduction <add>, %56, %cst_16 [0] : vector<2x128xf32> to vector<128xf32>
    %58 = vector.shape_cast %57 : vector<128xf32> to vector<1x128xf32>
    %cst_17 = arith.constant 2.000000e+00 : f32
    %59 = vector.broadcast %cst_17 : f32 to vector<1x128xf32>
    %60 = arith.divf %58, %59 : vector<1x128xf32>
    %61 = vector.extract_strided_slice %50 {offsets = [2, 0], sizes = [3, 128], strides = [1, 1]} : vector<16x128xf32> to vector<3x128xf32>
    %cst_18 = arith.constant dense<0.000000e+00> : vector<128xf32>
    %62 = vector.multi_reduction <add>, %61, %cst_18 [0] : vector<3x128xf32> to vector<128xf32>
    %63 = vector.shape_cast %62 : vector<128xf32> to vector<1x128xf32>
    %cst_19 = arith.constant 3.000000e+00 : f32
    %64 = vector.broadcast %cst_19 : f32 to vector<1x128xf32>
    %65 = arith.divf %63, %64 : vector<1x128xf32>
    %66 = vector.extract_strided_slice %50 {offsets = [4, 0], sizes = [2, 128], strides = [1, 1]} : vector<16x128xf32> to vector<2x128xf32>
    %cst_20 = arith.constant dense<0.000000e+00> : vector<128xf32>
    %67 = vector.multi_reduction <add>, %66, %cst_20 [0] : vector<2x128xf32> to vector<128xf32>
    %68 = vector.shape_cast %67 : vector<128xf32> to vector<1x128xf32>
    %cst_21 = arith.constant 2.000000e+00 : f32
    %69 = vector.broadcast %cst_21 : f32 to vector<1x128xf32>
    %70 = arith.divf %68, %69 : vector<1x128xf32>
    %71 = vector.extract_strided_slice %50 {offsets = [5, 0], sizes = [3, 128], strides = [1, 1]} : vector<16x128xf32> to vector<3x128xf32>
    %cst_22 = arith.constant dense<0.000000e+00> : vector<128xf32>
    %72 = vector.multi_reduction <add>, %71, %cst_22 [0] : vector<3x128xf32> to vector<128xf32>
    %73 = vector.shape_cast %72 : vector<128xf32> to vector<1x128xf32>
    %cst_23 = arith.constant 3.000000e+00 : f32
    %74 = vector.broadcast %cst_23 : f32 to vector<1x128xf32>
    %75 = arith.divf %73, %74 : vector<1x128xf32>
    %76 = vector.extract_strided_slice %50 {offsets = [7, 0], sizes = [2, 128], strides = [1, 1]} : vector<16x128xf32> to vector<2x128xf32>
    %cst_24 = arith.constant dense<0.000000e+00> : vector<128xf32>
    %77 = vector.multi_reduction <add>, %76, %cst_24 [0] : vector<2x128xf32> to vector<128xf32>
    %78 = vector.shape_cast %77 : vector<128xf32> to vector<1x128xf32>
    %cst_25 = arith.constant 2.000000e+00 : f32
    %79 = vector.broadcast %cst_25 : f32 to vector<1x128xf32>
    %80 = arith.divf %78, %79 : vector<1x128xf32>
    %81 = vector.extract_strided_slice %50 {offsets = [8, 0], sizes = [3, 128], strides = [1, 1]} : vector<16x128xf32> to vector<3x128xf32>
    %cst_26 = arith.constant dense<0.000000e+00> : vector<128xf32>
    %82 = vector.multi_reduction <add>, %81, %cst_26 [0] : vector<3x128xf32> to vector<128xf32>
    %83 = vector.shape_cast %82 : vector<128xf32> to vector<1x128xf32>
    %cst_27 = arith.constant 3.000000e+00 : f32
    %84 = vector.broadcast %cst_27 : f32 to vector<1x128xf32>
    %85 = arith.divf %83, %84 : vector<1x128xf32>
    %86 = vector.extract_strided_slice %50 {offsets = [10, 0], sizes = [2, 128], strides = [1, 1]} : vector<16x128xf32> to vector<2x128xf32>
    %cst_28 = arith.constant dense<0.000000e+00> : vector<128xf32>
    %87 = vector.multi_reduction <add>, %86, %cst_28 [0] : vector<2x128xf32> to vector<128xf32>
    %88 = vector.shape_cast %87 : vector<128xf32> to vector<1x128xf32>
    %cst_29 = arith.constant 2.000000e+00 : f32
    %89 = vector.broadcast %cst_29 : f32 to vector<1x128xf32>
    %90 = arith.divf %88, %89 : vector<1x128xf32>
    %91 = vector.extract_strided_slice %50 {offsets = [11, 0], sizes = [3, 128], strides = [1, 1]} : vector<16x128xf32> to vector<3x128xf32>
    %cst_30 = arith.constant dense<0.000000e+00> : vector<128xf32>
    %92 = vector.multi_reduction <add>, %91, %cst_30 [0] : vector<3x128xf32> to vector<128xf32>
    %93 = vector.shape_cast %92 : vector<128xf32> to vector<1x128xf32>
    %cst_31 = arith.constant 3.000000e+00 : f32
    %94 = vector.broadcast %cst_31 : f32 to vector<1x128xf32>
    %95 = arith.divf %93, %94 : vector<1x128xf32>
    %96 = vector.extract_strided_slice %50 {offsets = [13, 0], sizes = [2, 128], strides = [1, 1]} : vector<16x128xf32> to vector<2x128xf32>
    %cst_32 = arith.constant dense<0.000000e+00> : vector<128xf32>
    %97 = vector.multi_reduction <add>, %96, %cst_32 [0] : vector<2x128xf32> to vector<128xf32>
    %98 = vector.shape_cast %97 : vector<128xf32> to vector<1x128xf32>
    %cst_33 = arith.constant 2.000000e+00 : f32
    %99 = vector.broadcast %cst_33 : f32 to vector<1x128xf32>
    %100 = arith.divf %98, %99 : vector<1x128xf32>
    %101 = vector.extract_strided_slice %50 {offsets = [14, 0], sizes = [2, 128], strides = [1, 1]} : vector<16x128xf32> to vector<2x128xf32>
    %cst_34 = arith.constant dense<0.000000e+00> : vector<128xf32>
    %102 = vector.multi_reduction <add>, %101, %cst_34 [0] : vector<2x128xf32> to vector<128xf32>
    %103 = vector.shape_cast %102 : vector<128xf32> to vector<1x128xf32>
    %cst_35 = arith.constant 2.000000e+00 : f32
    %104 = vector.broadcast %cst_35 : f32 to vector<1x128xf32>
    %105 = arith.divf %103, %104 : vector<1x128xf32>
    %106 = tpu.concatenate %55, %60, %65, %70, %75, %80, %85, %90, %95, %100, %105 in 0 : vector<1x128xf32>, vector<1x128xf32>, vector<1x128xf32>, vector<1x128xf32>, vector<1x128xf32>, vector<1x128xf32>, vector<1x128xf32>, vector<1x128xf32>, vector<1x128xf32>, vector<1x128xf32>, vector<1x128xf32> -> vector<11x128xf32>
    %c0_36 = arith.constant 0 : index
    %c0_37 = arith.constant 0 : index
    %107 = vector.load %arg5[%c0_36, %c0_37] : memref<1x128xf32, #tpu.memory_space<vmem>>, vector<1x128xf32>
    %108 = vector.broadcast %107 : vector<1x128xf32> to vector<11x128xf32>
    %109 = arith.mulf %106, %108 : vector<11x128xf32>
    %c0_38 = arith.constant 0 : index
    %c0_39 = arith.constant 0 : index
    %110 = vector.load %arg6[%c0_38, %c0_39] : memref<1x128xf32, #tpu.memory_space<vmem>>, vector<1x128xf32>
    %111 = vector.broadcast %110 : vector<1x128xf32> to vector<11x128xf32>
    %112 = arith.addf %109, %111 : vector<11x128xf32>
    %113 = arith.truncf %112 : vector<11x128xf32> to vector<11x128xbf16>
    %c0_40 = arith.constant 0 : index
    %c0_41 = arith.constant 0 : index
    %114 = vector.load %arg7[%c0_40, %c0_41] : memref<128x160xbf16, #tpu.memory_space<vmem>>, vector<128x160xbf16>
    %cst_42 = arith.constant dense<0.000000e+00> : vector<11x160xf32>
    %115 = tpu.matmul %113, %114, %cst_42 {dimension_numbers = #tpu.dot_dimension_numbers<[1], [0], [0], [1], [0, 0, 1, 1], [], []>} : vector<11x128xbf16>, vector<128x160xbf16>, vector<11x160xf32> -> vector<11x160xf32>
    %cst_43 = arith.constant 0.000000e+00 : f32
    %116 = vector.broadcast %cst_43 : f32 to vector<11x160xf32>
    %117 = arith.maximumf %115, %116 : vector<11x160xf32>
    %c0_44 = arith.constant 0 : index
    %c0_45 = arith.constant 0 : index
    %118 = vector.load %arg8[%c0_44, %c0_45] : memref<1x160xf32, #tpu.memory_space<vmem>>, vector<1x160xf32>
    %119 = vector.broadcast %118 : vector<1x160xf32> to vector<11x160xf32>
    %120 = arith.mulf %117, %119 : vector<11x160xf32>
    %c0_46 = arith.constant 0 : index
    %c0_47 = arith.constant 0 : index
    %121 = vector.load %arg9[%c0_46, %c0_47] : memref<1x160xf32, #tpu.memory_space<vmem>>, vector<1x160xf32>
    %122 = vector.broadcast %121 : vector<1x160xf32> to vector<11x160xf32>
    %123 = arith.addf %120, %122 : vector<11x160xf32>
    %124 = arith.truncf %123 : vector<11x160xf32> to vector<11x160xbf16>
    %c0_48 = arith.constant 0 : index
    %c0_49 = arith.constant 0 : index
    %125 = vector.load %arg10[%c0_48, %c0_49] : memref<160x96xbf16, #tpu.memory_space<vmem>>, vector<160x96xbf16>
    %cst_50 = arith.constant dense<0.000000e+00> : vector<11x96xf32>
    %126 = tpu.matmul %124, %125, %cst_50 {dimension_numbers = #tpu.dot_dimension_numbers<[1], [0], [0], [1], [0, 0, 1, 1], [], []>} : vector<11x160xbf16>, vector<160x96xbf16>, vector<11x96xf32> -> vector<11x96xf32>
    %cst_51 = arith.constant 0.000000e+00 : f32
    %127 = vector.broadcast %cst_51 : f32 to vector<11x96xf32>
    %128 = arith.maximumf %126, %127 : vector<11x96xf32>
    %c0_52 = arith.constant 0 : index
    %c0_53 = arith.constant 0 : index
    %129 = vector.load %arg11[%c0_52, %c0_53] : memref<1x96xf32, #tpu.memory_space<vmem>>, vector<1x96xf32>
    %130 = vector.broadcast %129 : vector<1x96xf32> to vector<11x96xf32>
    %131 = arith.mulf %128, %130 : vector<11x96xf32>
    %c0_54 = arith.constant 0 : index
    %c0_55 = arith.constant 0 : index
    %132 = vector.load %arg12[%c0_54, %c0_55] : memref<1x96xf32, #tpu.memory_space<vmem>>, vector<1x96xf32>
    %133 = vector.broadcast %132 : vector<1x96xf32> to vector<11x96xf32>
    %134 = arith.addf %131, %133 : vector<11x96xf32>
    %135 = arith.truncf %134 : vector<11x96xf32> to vector<11x96xbf16>
    %c0_56 = arith.constant 0 : index
    %c0_57 = arith.constant 0 : index
    %136 = vector.load %arg13[%c0_56, %c0_57] : memref<96x96xbf16, #tpu.memory_space<vmem>>, vector<96x96xbf16>
    %cst_58 = arith.constant dense<0.000000e+00> : vector<11x96xf32>
    %137 = tpu.matmul %135, %136, %cst_58 {dimension_numbers = #tpu.dot_dimension_numbers<[1], [0], [0], [1], [0, 0, 1, 1], [], []>} : vector<11x96xbf16>, vector<96x96xbf16>, vector<11x96xf32> -> vector<11x96xf32>
    %cst_59 = arith.constant 0.000000e+00 : f32
    %138 = vector.broadcast %cst_59 : f32 to vector<11x96xf32>
    %139 = arith.maximumf %137, %138 : vector<11x96xf32>
    %c0_60 = arith.constant 0 : index
    %c0_61 = arith.constant 0 : index
    %140 = vector.load %arg14[%c0_60, %c0_61] : memref<1x96xf32, #tpu.memory_space<vmem>>, vector<1x96xf32>
    %141 = vector.broadcast %140 : vector<1x96xf32> to vector<11x96xf32>
    %142 = arith.mulf %139, %141 : vector<11x96xf32>
    %c0_62 = arith.constant 0 : index
    %c0_63 = arith.constant 0 : index
    %143 = vector.load %arg15[%c0_62, %c0_63] : memref<1x96xf32, #tpu.memory_space<vmem>>, vector<1x96xf32>
    %144 = vector.broadcast %143 : vector<1x96xf32> to vector<11x96xf32>
    %145 = arith.addf %142, %144 : vector<11x96xf32>
    %cst_64 = arith.constant dense<0.000000e+00> : vector<96xf32>
    %146 = vector.multi_reduction <add>, %145, %cst_64 [0] : vector<11x96xf32> to vector<96xf32>
    %147 = vector.shape_cast %146 : vector<96xf32> to vector<1x96xf32>
    %cst_65 = arith.constant 1.100000e+01 : f32
    %148 = vector.broadcast %cst_65 : f32 to vector<1x96xf32>
    %149 = arith.divf %147, %148 : vector<1x96xf32>
    %150 = arith.truncf %149 : vector<1x96xf32> to vector<1x96xbf16>
    %c0_66 = arith.constant 0 : index
    %c0_67 = arith.constant 0 : index
    %151 = vector.load %arg16[%c0_66, %c0_67] : memref<96x256xbf16, #tpu.memory_space<vmem>>, vector<96x256xbf16>
    %cst_68 = arith.constant dense<0.000000e+00> : vector<1x256xf32>
    %152 = tpu.matmul %150, %151, %cst_68 {dimension_numbers = #tpu.dot_dimension_numbers<[1], [0], [0], [1], [0, 0, 1, 1], [], []>} : vector<1x96xbf16>, vector<96x256xbf16>, vector<1x256xf32> -> vector<1x256xf32>
    %c0_69 = arith.constant 0 : index
    %c0_70 = arith.constant 0 : index
    %153 = vector.load %arg17[%c0_69, %c0_70] : memref<1x256xf32, #tpu.memory_space<vmem>>, vector<1x256xf32>
    %154 = arith.addf %152, %153 : vector<1x256xf32>
    %cst_71 = arith.constant dense<0.000000e+00> : vector<1xf32>
    %155 = vector.multi_reduction <add>, %154, %cst_71 [1] : vector<1x256xf32> to vector<1xf32>
    %156 = vector.shape_cast %155 : vector<1xf32> to vector<1x1xf32>
    %cst_72 = arith.constant 2.560000e+02 : f32
    %157 = vector.broadcast %cst_72 : f32 to vector<1x1xf32>
    %158 = arith.divf %156, %157 : vector<1x1xf32>
    %159 = vector.broadcast %158 : vector<1x1xf32> to vector<1x256xf32>
    %160 = arith.subf %154, %159 : vector<1x256xf32>
    %161 = arith.mulf %160, %160 : vector<1x256xf32>
    %cst_73 = arith.constant dense<0.000000e+00> : vector<1xf32>
    %162 = vector.multi_reduction <add>, %161, %cst_73 [1] : vector<1x256xf32> to vector<1xf32>
    %163 = vector.shape_cast %162 : vector<1xf32> to vector<1x1xf32>
    %cst_74 = arith.constant 2.560000e+02 : f32
    %164 = vector.broadcast %cst_74 : f32 to vector<1x1xf32>
    %165 = arith.divf %163, %164 : vector<1x1xf32>
    %166 = vector.broadcast %158 : vector<1x1xf32> to vector<1x256xf32>
    %167 = arith.subf %154, %166 : vector<1x256xf32>
    %cst_75 = arith.constant 9.99999974E-6 : f32
    %168 = vector.broadcast %cst_75 : f32 to vector<1x1xf32>
    %169 = arith.addf %165, %168 : vector<1x1xf32>
    %170 = math.rsqrt %169 : vector<1x1xf32>
    %171 = vector.broadcast %170 : vector<1x1xf32> to vector<1x256xf32>
    %172 = arith.mulf %167, %171 : vector<1x256xf32>
    %c0_76 = arith.constant 0 : index
    %c0_77 = arith.constant 0 : index
    %173 = vector.load %arg18[%c0_76, %c0_77] : memref<1x256xf32, #tpu.memory_space<vmem>>, vector<1x256xf32>
    %174 = arith.mulf %172, %173 : vector<1x256xf32>
    %c0_78 = arith.constant 0 : index
    %c0_79 = arith.constant 0 : index
    %175 = vector.load %arg19[%c0_78, %c0_79] : memref<1x256xf32, #tpu.memory_space<vmem>>, vector<1x256xf32>
    %176 = arith.addf %174, %175 : vector<1x256xf32>
    %cst_80 = arith.constant 0.000000e+00 : f32
    %177 = vector.broadcast %cst_80 : f32 to vector<1x256xf32>
    %178 = arith.maximumf %176, %177 : vector<1x256xf32>
    %179 = arith.truncf %178 : vector<1x256xf32> to vector<1x256xbf16>
    %c0_81 = arith.constant 0 : index
    %c0_82 = arith.constant 0 : index
    %180 = vector.load %arg20[%c0_81, %c0_82] : memref<256x128xbf16, #tpu.memory_space<vmem>>, vector<256x128xbf16>
    %cst_83 = arith.constant dense<0.000000e+00> : vector<1x128xf32>
    %181 = tpu.matmul %179, %180, %cst_83 {dimension_numbers = #tpu.dot_dimension_numbers<[1], [0], [0], [1], [0, 0, 1, 1], [], []>} : vector<1x256xbf16>, vector<256x128xbf16>, vector<1x128xf32> -> vector<1x128xf32>
    %c0_84 = arith.constant 0 : index
    %c0_85 = arith.constant 0 : index
    %182 = vector.load %arg21[%c0_84, %c0_85] : memref<1x128xf32, #tpu.memory_space<vmem>>, vector<1x128xf32>
    %183 = arith.addf %181, %182 : vector<1x128xf32>
    %c0_86 = arith.constant 0 : index
    %c0_87 = arith.constant 0 : index
    %c0_88 = arith.constant 0 : index
    %184 = vector.load %arg22[%c0_86, %c0_87, %c0_88] : memref<1x1x128xf32, #tpu.memory_space<vmem>>, vector<1x1x128xf32>
    %185 = vector.shape_cast %184 : vector<1x1x128xf32> to vector<1x128xf32>
    %186 = vector.shape_cast %183 : vector<1x128xf32> to vector<1x1x128xf32>
    tpu.vector_store %arg22[%c0_86, %c0_87, %c0_88], %186 {strides = array<i32>} : memref<1x1x128xf32, #tpu.memory_space<vmem>>, vector<1x1x128xf32>,
    return
  }
  func.func @transform_0(%arg0: i32) -> (i32, i32, i32) {
    %c0_i32 = arith.constant 0 : i32
    %c0_i32_0 = arith.constant 0 : i32
    %c0_i32_1 = arith.constant 0 : i32
    return %arg0, %c0_i32, %c0_i32_0 : i32, i32, i32
  }
  func.func @transform_1(%arg0: i32) -> (i32, i32) {
    %c0_i32 = arith.constant 0 : i32
    %c0_i32_0 = arith.constant 0 : i32
    %c0_i32_1 = arith.constant 0 : i32
    return %c0_i32, %c0_i32_0 : i32, i32
  }
  func.func @transform_2(%arg0: i32) -> (i32, i32) {
    %c0_i32 = arith.constant 0 : i32
    %c0_i32_0 = arith.constant 0 : i32
    %c0_i32_1 = arith.constant 0 : i32
    return %c0_i32, %c0_i32_0 : i32, i32
  }
  func.func @transform_3(%arg0: i32) -> (i32, i32) {
    %c0_i32 = arith.constant 0 : i32
    %c0_i32_0 = arith.constant 0 : i32
    %c0_i32_1 = arith.constant 0 : i32
    return %c0_i32, %c0_i32_0 : i32, i32
  }
  func.func @transform_4(%arg0: i32) -> (i32, i32) {
    %c0_i32 = arith.constant 0 : i32
    %c0_i32_0 = arith.constant 0 : i32
    %c0_i32_1 = arith.constant 0 : i32
    return %c0_i32, %c0_i32_0 : i32, i32
  }
  func.func @transform_5(%arg0: i32) -> (i32, i32) {
    %c0_i32 = arith.constant 0 : i32
    %c0_i32_0 = arith.constant 0 : i32
    %c0_i32_1 = arith.constant 0 : i32
    return %c0_i32, %c0_i32_0 : i32, i32
  }
  func.func @transform_6(%arg0: i32) -> (i32, i32) {
    %c0_i32 = arith.constant 0 : i32
    %c0_i32_0 = arith.constant 0 : i32
    %c0_i32_1 = arith.constant 0 : i32
    return %c0_i32, %c0_i32_0 : i32, i32
  }
  func.func @transform_7(%arg0: i32) -> (i32, i32) {
    %c0_i32 = arith.constant 0 : i32
    %c0_i32_0 = arith.constant 0 : i32
    %c0_i32_1 = arith.constant 0 : i32
    return %c0_i32, %c0_i32_0 : i32, i32
  }
  func.func @transform_8(%arg0: i32) -> (i32, i32) {
    %c0_i32 = arith.constant 0 : i32
    %c0_i32_0 = arith.constant 0 : i32
    %c0_i32_1 = arith.constant 0 : i32
    return %c0_i32, %c0_i32_0 : i32, i32
  }
  func.func @transform_9(%arg0: i32) -> (i32, i32) {
    %c0_i32 = arith.constant 0 : i32
    %c0_i32_0 = arith.constant 0 : i32
    %c0_i32_1 = arith.constant 0 : i32
    return %c0_i32, %c0_i32_0 : i32, i32
  }
  func.func @transform_10(%arg0: i32) -> (i32, i32) {
    %c0_i32 = arith.constant 0 : i32
    %c0_i32_0 = arith.constant 0 : i32
    %c0_i32_1 = arith.constant 0 : i32
    return %c0_i32, %c0_i32_0 : i32, i32
  }
  func.func @transform_11(%arg0: i32) -> (i32, i32) {
    %c0_i32 = arith.constant 0 : i32
    %c0_i32_0 = arith.constant 0 : i32
    %c0_i32_1 = arith.constant 0 : i32
    return %c0_i32, %c0_i32_0 : i32, i32
  }
  func.func @transform_12(%arg0: i32) -> (i32, i32) {
    %c0_i32 = arith.constant 0 : i32
    %c0_i32_0 = arith.constant 0 : i32
    %c0_i32_1 = arith.constant 0 : i32
    return %c0_i32, %c0_i32_0 : i32, i32
  }
  func.func @transform_13(%arg0: i32) -> (i32, i32) {
    %c0_i32 = arith.constant 0 : i32
    %c0_i32_0 = arith.constant 0 : i32
    %c0_i32_1 = arith.constant 0 : i32
    return %c0_i32, %c0_i32_0 : i32, i32
  }
  func.func @transform_14(%arg0: i32) -> (i32, i32) {
    %c0_i32 = arith.constant 0 : i32
    %c0_i32_0 = arith.constant 0 : i32
    %c0_i32_1 = arith.constant 0 : i32
    return %c0_i32, %c0_i32_0 : i32, i32
  }
  func.func @transform_15(%arg0: i32) -> (i32, i32) {
    %c0_i32 = arith.constant 0 : i32
    %c0_i32_0 = arith.constant 0 : i32
    %c0_i32_1 = arith.constant 0 : i32
    return %c0_i32, %c0_i32_0 : i32, i32
  }
  func.func @transform_16(%arg0: i32) -> (i32, i32) {
    %c0_i32 = arith.constant 0 : i32
    %c0_i32_0 = arith.constant 0 : i32
    %c0_i32_1 = arith.constant 0 : i32
    return %c0_i32, %c0_i32_0 : i32, i32
  }
  func.func @transform_17(%arg0: i32) -> (i32, i32) {
    %c0_i32 = arith.constant 0 : i32
    %c0_i32_0 = arith.constant 0 : i32
    %c0_i32_1 = arith.constant 0 : i32
    return %c0_i32, %c0_i32_0 : i32, i32
  }
  func.func @transform_18(%arg0: i32) -> (i32, i32) {
    %c0_i32 = arith.constant 0 : i32
    %c0_i32_0 = arith.constant 0 : i32
    %c0_i32_1 = arith.constant 0 : i32
    return %c0_i32, %c0_i32_0 : i32, i32
  }
  func.func @transform_19(%arg0: i32) -> (i32, i32) {
    %c0_i32 = arith.constant 0 : i32
    %c0_i32_0 = arith.constant 0 : i32
    %c0_i32_1 = arith.constant 0 : i32
    return %c0_i32, %c0_i32_0 : i32, i32
  }
  func.func @transform_20(%arg0: i32) -> (i32, i32) {
    %c0_i32 = arith.constant 0 : i32
    %c0_i32_0 = arith.constant 0 : i32
    %c0_i32_1 = arith.constant 0 : i32
    return %c0_i32, %c0_i32_0 : i32, i32
  }
  func.func @transform_21(%arg0: i32) -> (i32, i32, i32) {
    %c0_i32 = arith.constant 0 : i32
    %c0_i32_0 = arith.constant 0 : i32
    %c0_i32_1 = arith.constant 0 : i32
    return %arg0, %c0_i32, %c0_i32_0 : i32, i32, i32
  }
}

</mosaic_0001>

<bundles_post_ra>
// kernel: cnn_forward.1
= control target key start
LH: loop header
LB: loop body
LE: loop exit
PB: predicated region body
PF: predicated region fallthrough
CT: control target
= control target key end

     0   :  { %s3772_s0 = inlined_call_operand.vmem [shape: f32[2,10,256], index: 0, kind: input, shape index: {}]   ;;  %s3773_s1 = inlined_call_operand.vmem [shape: bf16[128,10], index: 1, kind: input, shape index: {}]   ;;  %s3774_s2 = inlined_call_operand.vmem [shape: bf16[128,160], index: 2, kind: input, shape index: {}]   ;;  %s3775_s3 = inlined_call_operand.vmem [shape: bf16[160,128], index: 3, kind: input, shape index: {}]   ;;  %s3776_s4 = inlined_call_operand.vmem [shape: f32[1,128], index: 4, kind: input, shape index: {}]   ;;  %s3777_s5 = inlined_call_operand.vmem [shape: f32[1,128], index: 5, kind: input, shape index: {}]   ;;  %s3778_s6 = inlined_call_operand.vmem [shape: bf16[128,160], index: 6, kind: input, shape index: {}]   ;;  %s3779_s7 = inlined_call_operand.vmem [shape: f32[1,160], index: 7, kind: input, shape index: {}]   ;;  %s3780_s8 = inlined_call_operand.vmem [shape: f32[1,160], index: 8, kind: input, shape index: {}]   ;;  %s3781_s9 = inlined_call_operand.vmem [shape: bf16[160,96], index: 9, kind: input, shape index: {}]   ;;  %s3782_s10 = inlined_call_operand.vmem [shape: f32[1,96], index: 10, kind: input, shape index: {}]   ;;  %s3783_s11 = inlined_call_operand.vmem [shape: f32[1,96], index: 11, kind: input, shape index: {}]   ;;  %s3784_s12 = inlined_call_operand.vmem [shape: bf16[96,96], index: 12, kind: input, shape index: {}]   ;;  %s3785_s13 = inlined_call_operand.vmem [shape: f32[1,96], index: 13, kind: input, shape index: {}]   ;;  %s3786_s14 = inlined_call_operand.vmem [shape: f32[1,96], index: 14, kind: input, shape index: {}]   ;;  %s3787_s15 = inlined_call_operand.vmem [shape: bf16[96,256], index: 15, kind: input, shape index: {}]   ;;  %s3788_s16 = inlined_call_operand.vmem [shape: f32[1,256], index: 16, kind: input, shape index: {}]   ;;  %s3789_s17 = inlined_call_operand.vmem [shape: f32[1,256], index: 17, kind: input, shape index: {}]   ;;  %s3790_s18 = inlined_call_operand.vmem [shape: f32[1,256], index: 18, kind: input, shape index: {}]   ;;  %s3791_s19 = inlined_call_operand.vmem [shape: bf16[256,128], index: 19, kind: input, shape index: {}]   ;;  %s3792_s20 = inlined_call_operand.vmem [shape: f32[1,128], index: 20, kind: input, shape index: {}]   ;;  %s3793_s21 = inlined_call_operand.hbm [shape: f32[2,1,128], index: 21, kind: output, shape index: {}]  }
   0x1   :  { %3804 = sst [smem:[#allocation11_spill]] %s3772_s0 }
   0x2   :  { %3805 = sst [smem:[#allocation12_spill]] %s3773_s1 }
   0x3   :  { %3806 = sst [smem:[#allocation13_spill]] %s3774_s2 }
   0x4   :  { %3807 = sst [smem:[#allocation14_spill]] %s3775_s3 }
   0x5   :  { %3808 = sst [smem:[#allocation15_spill]] %s3776_s4 }
   0x6   :  { %3809 = sst [smem:[#allocation16_spill]] %s3777_s5 }
   0x7   :  { %3810 = sst [smem:[#allocation17_spill]] %s3778_s6 }
   0x8   :  { %3811 = sst [smem:[#allocation18_spill]] %s3779_s7 }
   0x9   :  { %26 = vsyncpa [#allocation3], 0 }
   0xa   :  { %28 = vsyncpa [#allocation3 + $0x1], 0  ;;  %s3247_s2 = smov 0   ;;  %s3249_s25 = smov 0  }
   0xb   :  { %s3251_s26 = smov 0   ;;  %s3253_s27 = smov 0  }
   0xc LB: > { %3812 = sst [smem:[#allocation5_spill]] %s3119_s2  ;;  %s3268_s3 = sadd.s32 4294967295, %s3131_s27   ;;  %s3131_s27 = sphi %s3253_s27, %s3831_s27   ;;  %s3127_s26 = sphi %s3251_s26, %s3833_s26   ;;  %s3123_s25 = sphi %s3249_s25, %s3835_s25   ;;  %s3119_s2 = sphi %s3247_s2, %s3834_s2  }
   0xd   : > { %3813 = sst [smem:[#allocation6_spill]] %s3127_s26  ;;  %s2726_s28 = sadd.s32 4294967294, %s3131_s27  }
   0xe   : > { %3814 = sst [smem:[#allocation7_spill]] %s3131_s27  ;;  %s3272_s29 = sadd.s32 1, %s3131_s27  }
   0xf   : > { %3815 = sst [smem:[#allocation8_spill]] %s3272_s29  ;;  %s487_s0 = sadd.s32 1, %s3127_s26 }
  0x10   : > { %s484_s4 = ssub.s32 %s3131_s27, %s3272_s29  ;;  %p497_p0 = scmp.ne.s32.totalorder %s3127_s26, %s3123_s25 }
  0x11   : > { %p485_p1 = scmp.eq.s32.totalorder %s484_s4, 0  ;;  %p498_p2 = scmp.eq.s32.totalorder %s3268_s3, 1 }
  0x12   : > { %p503_p3 = scmp.ne.s32.totalorder %s3123_s25, %s3119_s2  ;;  %p504_p4 = scmp.eq.s32.totalorder %s2726_s28, 1 }
  0x13   : > { %s3283_s30 = scalar_select %p485_p1, %s3127_s26, %s487_s0  }
  0x14   : > { %p3285_p5 = por %p498_p2, %p497_p0  ;;  %p3289_p6 = por %p504_p4, %p503_p3 }
  0x15   : > { %3816 = sst [smem:[#allocation9_spill]] %s3283_s30  ;;  %p2729_p7 = scmp.ge.s32.totalorder %s3131_s27, 1 }
  0x16   : > { %s3818_s22 = scalar_select %p3289_p6, 1, 0 }
  0x17   : > { %p590_p8 = scmp.lt.s32.totalorder %s3131_s27, 3 }
  0x18   : > { %3819 = sst [smem:[#allocation10_spill]] %s3818_s22 }
  0x19   : > { %p591_p9 = pnand %p2729_p7, %p590_p8 }
  0x1a   : > { %p649_p10 = scmp.lt.s32.totalorder (!%p591_p9), %s3268_s3, 1  ;;  %s3820_s0 = sld [smem:[#allocation11_spill]] (!%p591_p9) }
  0x1b   : > { %594 = sbr.rel (%p591_p9) target bundleno = 2295 (0x8f7), region = 104  ;;  %s3821_s29 = sld [smem:[#allocation12_spill]] (!%p591_p9) }
  0x1c   : > { %s3822_s28 = sld [smem:[#allocation13_spill]] (!%p591_p9) }
  0x1d   : > { %s3824_s6 = sld [smem:[#allocation17_spill]] (!%p591_p9) }
  0x1e   : > { %s3825_s30 = sld [smem:[#allocation15_spill]] (!%p591_p9) }
  0x1f   : > { %s3827_s7 = sld [smem:[#allocation18_spill]] (!%p591_p9) }
  0x20   : > { %v3133_v0 = vmov 0   ;;  %s650_s23 = scalar_select %p649_p10, %s3268_s3, 1  ;;  %vm742_vm0 = vcmask 1044480   ;;  %vm717_vm1 = vcmask 80896   ;;  %vm1439_vm2 = vcmask 261120  }
  0x21   : > { %781 = vmatprep.mubr.bf16.mxu0 %v3133_v0  ;;  %831 = vmatprep.mubr.bf16.mxu1 %v3133_v0  ;;  %v2953_v7 = vld [vmem:[%s3821_s29] sm:$0xff]   ;;  %v2958_v8 = vld [vmem:[%s3821_s29 + $0x28] sm:$0xff]   ;;  %v2959_v11 = vld [vmem:[%s3821_s29 + $0x30] sm:$0xff]   ;;  %vm1713_vm3 = vcmask 1041408   ;;  %vm1736_vm4 = vcmask 1042432   ;;  %vm1767_vm5 = vcmask 1040384  }
  0x22   : > { %s2863_s1 = sshll.u32 %s650_s23, 5  ;;  %v2954_v10 = vld [vmem:[%s3821_s29 + $0x8] sm:$0xff]   ;;  %v2955_v12 = vld [vmem:[%s3821_s29 + $0x10] sm:$0xff]   ;;  %v2960_v13 = vld [vmem:[%s3821_s29 + $0x38] sm:$0xff]   ;;  %s3823_s23 = sld [smem:[#allocation14_spill]]  ;;  %vm1831_vm6 = vcmask 1043456  }
  0x23   : > { %s653_s4 = scalar_lea.vmem %s3820_s0, %s2863_s1  ;;  %v2956_v14 = vld [vmem:[%s3821_s29 + $0x18] sm:$0xff]   ;;  %v2957_v15 = vld [vmem:[%s3821_s29 + $0x20] sm:$0xff]   ;;  %vm1834_vm7 = vcmask 1045504   ;;  %vm1836_vm8 = vcmask 1046528   ;;  %s3826_s1 = sld [smem:[#allocation16_spill]]  ;;  %vm3135_vm9 = vmmov 0  }
  0x24   : > { %v656_v1 = vld [vmem:[%s653_s4 + $0x8] sm:$0xff]  ;;  %v658_v2 = vld [vmem:[%s653_s4 + $0x18] sm:$0x3]  ;;  %v655_v3 = vld [vmem:[%s653_s4] sm:$0xff]  ;;  %vm2229_vm10 = vcmask 785408   ;;  %vm2295_vm11 = vcmask 780288  }
  0x25   : > { %v676_v4 = vpack.c.bf16 %v658_v2, %v656_v1  ;;  %v657_v5 = vld [vmem:[%s653_s4 + $0x10] sm:$0x3]  ;;  %v2963_v17 = vld [vmem:[%s3822_s28 + $0x74] ss:$8 sps:$4 sm:$0xff]   ;;  %v2966_v18 = vld [vmem:[%s3822_s28 + $0x64] ss:$8 sps:$4 sm:$0xff]  }
  0x26   : > { %v675_v6 = vpack.c.bf16 %v657_v5, %v655_v3  ;;  %v2961_v16 = vld [vmem:[%s3822_s28 + $0x70] ss:$8 sps:$4 sm:$0xff]   ;;  %v2964_v19 = vld [vmem:[%s3822_s28 + $0x60] ss:$8 sps:$4 sm:$0xff]   ;;  %v2969_v20 = vld [vmem:[%s3822_s28 + $0x54] ss:$8 sps:$4 sm:$0xff]  }
  0x27   : > { %2740 = vmatprep.subr.msk.bf16.mxu0 %vm742_vm0, %v676_v4  ;;  %2909 = vmatprep.subr.msk.bf16.mxu1 %vm742_vm0, %v676_v4  ;;  %v2967_v21 = vld [vmem:[%s3822_s28 + $0x50] ss:$8 sps:$4 sm:$0xff]   ;;  %v2972_v22 = vld [vmem:[%s3822_s28 + $0x44] ss:$8 sps:$4 sm:$0xff]   ;;  %v2970_v23 = vld [vmem:[%s3822_s28 + $0x40] ss:$8 sps:$4 sm:$0xff]  }
  0x28   : > { %v744_v9 = vsel %vm742_vm0, %v675_v6, 0  ;;  %v2975_v24 = vld [vmem:[%s3822_s28 + $0x34] ss:$8 sps:$4 sm:$0xff]   ;;  %v2973_v25 = vld [vmem:[%s3822_s28 + $0x30] ss:$8 sps:$4 sm:$0xff]   ;;  %s2860_s0 = sshll.u32 %s3268_s3, 4 }
  0x29   : > { %764 = vmatpush1.bf16.msra.mxu0 %v744_v9  ;;  %2910 = vmatpush1.bf16.msra.mxu1 %v744_v9  ;;  %v2978_v26 = vld [vmem:[%s3822_s28 + $0x24] ss:$8 sps:$4 sm:$0xff]   ;;  %v2976_v27 = vld [vmem:[%s3822_s28 + $0x20] ss:$8 sps:$4 sm:$0xff]   ;;  %v2981_v28 = vld [vmem:[%s3822_s28 + $0x14] ss:$8 sps:$4 sm:$0xff]  }
  0x2a   : > { %1488 = vmatprep.subr.bf16.mxu0 %v3133_v0  ;;  %1070 = vmatprep.subr.bf16.mxu1 %v2963_v17  ;;  %v2979_v29 = vld [vmem:[%s3822_s28 + $0x10] ss:$8 sps:$4 sm:$0xff]   ;;  %v2982_v30 = vld [vmem:[%s3822_s28] ss:$8 sps:$4 sm:$0xff]   ;;  %v2984_v31 = vld [vmem:[%s3822_s28 + $0x4] ss:$8 sps:$4 sm:$0xff]  }
  0x2b   : > { %s3136_s3 = smov [#allocation2]  }
  0x2c   : > { %2741 = vmatmul.mubr.msk.bf16.vlgmr.msra.gmra.mxu0 %vm717_vm1, %v2953_v7  ;;  %2746 = vmatmul.mubr.msk.bf16.vlgmr.msra.gmra.mxu1 %vm717_vm1, %v2958_v8 }
  0x2d   : > { %791 = vmatprep.mubr.bf16.mxu0 %v3133_v0  ;;  %841 = vmatprep.mubr.bf16.mxu1 %v3133_v0 }
  0x2e   : > { %1071 = vmatpush1.bf16.msra.mxu1 %v2961_v16 }
  0x2f   : > { %1072 = vmatprep.subr.bf16.mxu1 %v2966_v18 }
  0x32   : > { %1073 = vmatpush1.bf16.msra.mxu1 %v2964_v19 }
  0x33   : > { %1074 = vmatprep.subr.bf16.mxu1 %v2969_v20 }
  0x34   : > { %2742 = vmatmul.mubr.msk.bf16.gmra.mxu0 %vm717_vm1, %v2954_v10  ;;  %2747 = vmatmul.mubr.msk.bf16.gmra.mxu1 %vm717_vm1, %v2959_v11 }
  0x35   : > { %801 = vmatprep.mubr.bf16.mxu0 %v3133_v0  ;;  %851 = vmatprep.mubr.bf16.mxu1 %v3133_v0 }
  0x36   : > { %1075 = vmatpush1.bf16.msra.mxu1 %v2967_v21 }
  0x37   : > { %1076 = vmatprep.subr.bf16.mxu1 %v2972_v22 }
  0x3a   : > { %1077 = vmatpush1.bf16.msra.mxu1 %v2970_v23 }
  0x3b   : > { %1078 = vmatprep.subr.bf16.mxu1 %v2975_v24 }
  0x3c   : > { %2743 = vmatmul.mubr.msk.bf16.gmra.mxu0 %vm717_vm1, %v2955_v12  ;;  %2748 = vmatmul.mubr.msk.bf16.gmra.mxu1 %vm717_vm1, %v2960_v13 }
  0x3d   : > { %811 = vmatprep.mubr.bf16.mxu0 %v3133_v0  ;;  %1102 = vmatprep.mubr.bf16.mxu1 %v3133_v0 }
  0x3e   : > { %1079 = vmatpush1.bf16.msra.mxu1 %v2973_v25 }
  0x3f   : > { %1080 = vmatprep.subr.bf16.mxu1 %v2978_v26 }
  0x42   : > { %1081 = vmatpush1.bf16.msra.mxu1 %v2976_v27 }
  0x43   : > { %1082 = vmatprep.subr.bf16.mxu1 %v2981_v28 }
  0x44   : > { %2744 = vmatmul.mubr.msk.bf16.gmra.mxu0 %vm717_vm1, %v2956_v14 }
  0x45   : > { %821 = vmatprep.mubr.bf16.mxu0 %v3133_v0 }
  0x46   : > { %1083 = vmatpush1.bf16.msra.mxu1 %v2979_v29 }
  0x47   : > { %1084 = vmatprep.subr.bf16.mxu1 %v2984_v31 }
  0x4a   : > { %1085 = vmatpush1.bf16.msra.mxu1 %v2982_v30 }
  0x4c   : > { %2745 = vmatmul.mubr.msk.bf16.gmra.mxu0 %vm717_vm1, %v2957_v15 }
  0xec   : > { %v783_v32 = vpop.f32.mrf.mxu0  ;;  %v833_v49 = vpop.f32.mrf.mxu1 }
  0xed   : > { %v862_v33 = vmax.f32 %v783_v32, 0.0  ;;  %v882_v14 = vmax.f32 %v833_v49, 0.0 }
  0xee   : > { %v785_v34 = vpop.f32.mrf.mxu0  ;;  %v835_v54 = vpop.f32.mrf.mxu1 }
  0xef   : > { %894 = vxpose.xlu0.b32.start [1/16] %v862_v33, 128  ;;  %v863_v35 = vmax.f32 %v785_v34, 0.0  ;;  %v883_v17 = vmax.f32 %v835_v54, 0.0  ;;  %v2985_v33 = vld [vmem:[%s3823_s23 + $0x38] sm:$0xff]  }
  0xf0   : > { %v787_v36 = vpop.f32.mrf.mxu0  ;;  %v837_v59 = vpop.f32.mrf.mxu1  ;;  %1489 = vmatpush1.bf16.msra.mxu0 %v2985_v33 }
  0xf1   : > { %v864_v37 = vmax.f32 %v787_v36, 0.0  ;;  %926 = vxpose.xlu1.b32.start [1/16] %v863_v35, 128  ;;  %v884_v19 = vmax.f32 %v837_v59, 0.0  ;;  %v2986_v35 = vld [vmem:[%s3823_s23 + $0x30] sm:$0xff]   ;;  %1490 = vmatprep.subr.bf16.mxu0 %v3133_v0 }
  0xf2   : > { %v789_v38 = vpop.f32.mrf.mxu0  ;;  %v839_v1 = vpop.f32.mrf.mxu1 }
  0xf3   : > { %v865_v39 = vmax.f32 %v789_v38, 0.0  ;;  %895 = vxpose.xlu0.b32.cont [2/16] %v864_v37, 128  ;;  %v885_v20 = vmax.f32 %v839_v1, 0.0  ;;  %v2987_v38 = vld [vmem:[%s3823_s23 + $0x28] sm:$0xff]  }
  0xf4   : > { %v793_v40 = vpop.f32.mrf.mxu0  ;;  %v843_v6 = vpop.f32.mrf.mxu1  ;;  %1491 = vmatpush1.bf16.msra.mxu0 %v2986_v35 }
  0xf5   : > { %v866_v41 = vmax.f32 %v793_v40, 0.0  ;;  %927 = vxpose.xlu1.b32.cont [2/16] %v865_v39, 128  ;;  %v886_v21 = vmax.f32 %v843_v6, 0.0  ;;  %1492 = vmatprep.subr.bf16.mxu0 %v3133_v0  ;;  %v2988_v40 = vld [vmem:[%s3823_s23 + $0x20] sm:$0xff]  }
  0xf6   : > { %v795_v42 = vpop.f32.mrf.mxu0  ;;  %v845_v11 = vpop.f32.mrf.mxu1 }
  0xf7   : > { %v867_v43 = vmax.f32 %v795_v42, 0.0  ;;  %896 = vxpose.xlu0.b32.cont [3/16] %v866_v41, 128  ;;  %v887_v23 = vmax.f32 %v845_v11, 0.0  ;;  %v2993_v11 = vld [vmem:[%s3823_s23 + $0x48] sm:$0xff]  }
  0xf8   : > { %v797_v44 = vpop.f32.mrf.mxu0  ;;  %v847_v16 = vpop.f32.mrf.mxu1  ;;  %1493 = vmatpush1.bf16.msra.mxu0 %v2987_v38 }
  0xf9   : > { %v868_v45 = vmax.f32 %v797_v44, 0.0  ;;  %928 = vxpose.xlu1.b32.cont [3/16] %v867_v43, 128  ;;  %v888_v25 = vmax.f32 %v847_v16, 0.0  ;;  %1494 = vmatprep.subr.bf16.mxu0 %v3133_v0  ;;  %v2989_v43 = vld [vmem:[%s3823_s23 + $0x18] sm:$0xff]  }
  0xfa   : > { %v799_v46 = vpop.f32.mrf.mxu0  ;;  %v849_v18 = vpop.f32.mrf.mxu1 }
  0xfb   : > { %v869_v47 = vmax.f32 %v799_v46, 0.0  ;;  %897 = vxpose.xlu0.b32.cont [4/16] %v868_v45, 128  ;;  %v889_v26 = vmax.f32 %v849_v18, 0.0  ;;  %v2990_v45 = vld [vmem:[%s3823_s23 + $0x10] sm:$0xff]  }
  0xfc   : > { %v803_v48 = vpop.f32.mrf.mxu0  ;;  %v853_v22 = vpop.f32.mrf.mxu1  ;;  %1495 = vmatpush1.bf16.msra.mxu0 %v2988_v40 }
  0xfd   : > { %v870_v50 = vmax.f32 %v803_v48, 0.0  ;;  %929 = vxpose.xlu1.b32.cont [4/16] %v869_v47, 128  ;;  %v890_v27 = vmax.f32 %v853_v22, 0.0  ;;  %1496 = vmatprep.subr.bf16.mxu0 %v3133_v0  ;;  %v2991_v48 = vld [vmem:[%s3823_s23 + $0x8] sm:$0xff]  }
  0xfe   : > { %v805_v51 = vpop.f32.mrf.mxu0  ;;  %v855_v24 = vpop.f32.mrf.mxu1 }
  0xff   : > { %v871_v52 = vmax.f32 %v805_v51, 0.0  ;;  %898 = vxpose.xlu0.b32.cont [5/16] %v870_v50, 128  ;;  %v891_v29 = vmax.f32 %v855_v24, 0.0 }
 0x100   : > { %v807_v53 = vpop.f32.mrf.mxu0  ;;  %v857_v28 = vpop.f32.mrf.mxu1  ;;  %1497 = vmatpush1.bf16.msra.mxu0 %v2989_v43 }
 0x101   : > { %v872_v55 = vmax.f32 %v807_v53, 0.0  ;;  %930 = vxpose.xlu1.b32.cont [5/16] %v871_v52, 128  ;;  %v892_v31 = vmax.f32 %v857_v28, 0.0  ;;  %1498 = vmatprep.subr.bf16.mxu0 %v3133_v0 }
 0x102   : > { %v809_v56 = vpop.f32.mrf.mxu0  ;;  %v859_v30 = vpop.f32.mrf.mxu1 }
 0x103   : > { %v873_v57 = vmax.f32 %v809_v56, 0.0  ;;  %899 = vxpose.xlu0.b32.cont [6/16] %v872_v55, 128  ;;  %v893_v32 = vmax.f32 %v859_v30, 0.0 }
 0x104   : > { %v813_v58 = vpop.f32.mrf.mxu0  ;;  %1499 = vmatpush1.bf16.msra.mxu0 %v2990_v45 }
 0x105   : > { %v874_v60 = vmax.f32 %v813_v58, 0.0  ;;  %931 = vxpose.xlu1.b32.cont [6/16] %v873_v57, 128  ;;  %1500 = vmatprep.subr.bf16.mxu0 %v3133_v0 }
 0x106   : > { %v815_v61 = vpop.f32.mrf.mxu0 }
 0x107   : > { %v875_v62 = vmax.f32 %v815_v61, 0.0  ;;  %900 = vxpose.xlu0.b32.cont [7/16] %v874_v60, 128 }
 0x108   : > { %v817_v63 = vpop.f32.mrf.mxu0  ;;  %1501 = vmatpush1.bf16.msra.mxu0 %v2991_v48 }
 0x109   : > { %v876_v2 = vmax.f32 %v817_v63, 0.0  ;;  %932 = vxpose.xlu1.b32.cont [7/16] %v875_v62, 128  ;;  %1502 = vmatprep.subr.bf16.mxu0 %v3133_v0 }
 0x10a   : > { %v819_v3 = vpop.f32.mrf.mxu0 }
 0x10b   : > { %v877_v4 = vmax.f32 %v819_v3, 0.0  ;;  %901 = vxpose.xlu0.b32.cont [8/16] %v876_v2, 128 }
 0x10c   : > { %v823_v5 = vpop.f32.mrf.mxu0 }
 0x10d   : > { %v878_v7 = vmax.f32 %v823_v5, 0.0  ;;  %933 = vxpose.xlu1.b32.cont [8/16] %v877_v4, 128 }
 0x10e   : > { %v825_v8 = vpop.f32.mrf.mxu0 }
 0x10f   : > { %v879_v9 = vmax.f32 %v825_v8, 0.0  ;;  %902 = vxpose.xlu0.b32.cont [9/16] %v878_v7, 128 }
 0x110   : > { %v827_v10 = vpop.f32.mrf.mxu0 }
 0x111   : > { %v880_v12 = vmax.f32 %v827_v10, 0.0  ;;  %934 = vxpose.xlu1.b32.cont [9/16] %v879_v9, 128  ;;  %v2992_v9 = vld [vmem:[%s3823_s23] sm:$0xff]  }
 0x112   : > { %v829_v13 = vpop.f32.mrf.mxu0  ;;  %1503 = vmatpush1.bf16.msra.mxu0 %v2992_v9 }
 0x113   : > { %v881_v15 = vmax.f32 %v829_v13, 0.0  ;;  %903 = vxpose.xlu0.b32.cont [10/16] %v880_v12, 128  ;;  %1516 = vmatprep.subr.bf16.mxu0 %v3133_v0  ;;  %v2994_v13 = vld [vmem:[%s3823_s23 + $0x40] sm:$0xff]   ;;  %s647_s23 = sand.u32 1, %s3123_s25  }
 0x114   : > { %s648_s4 = scalar_lea.vmem [#allocation2], %s647_s23  ;;  %s2659_s22 = scalar_lea.sflag [#allocation3], %s647_s23 }
 0x115   : > { %935 = vxpose.xlu1.b32.cont [10/16] %v881_v15, 128  ;;  %s2671_s26 = sshll.u32 %s648_s4, 4  ;;  %s2672_s26 = int_to_ptr.vmem [resolvable:$true] %s2671_s26 }
 0x116   : > { %1517 = vmatpush2.bf16.msra.mxu0 %v2993_v11 }
 0x117   : > { %904 = vxpose.xlu0.b32.cont [11/16] %v882_v14, 128  ;;  %1518 = vmatprep.subr.bf16.mxu0 %v3133_v0 }
 0x119   : > { %936 = vxpose.xlu1.b32.cont [11/16] %v883_v17, 128 }
 0x11a   : > { %1519 = vmatpush2.bf16.msra.mxu0 %v2994_v13 }
 0x11b   : > { %905 = vxpose.xlu0.b32.cont [12/16] %v884_v19, 128  ;;  %2119 = vmatprep.subr.bf16.mxu0 %v3133_v0 }
 0x11d   : > { %937 = vxpose.xlu1.b32.cont [12/16] %v885_v20, 128 }
 0x11f   : > { %906 = vxpose.xlu0.b32.cont [13/16] %v886_v21, 128 }
 0x121   : > { %938 = vxpose.xlu1.b32.cont [13/16] %v887_v23, 128 }
 0x123   : > { %907 = vxpose.xlu0.b32.cont [14/16] %v888_v25, 128 }
 0x125   : > { %939 = vxpose.xlu1.b32.cont [14/16] %v889_v26, 128 }
 0x127   : > { %908 = vxpose.xlu0.b32.cont [15/16] %v890_v27, 128 }
 0x129   : > { %940 = vxpose.xlu1.b32.cont [15/16] %v891_v29, 128 }
 0x12b   : > { %909 = vxpose.xlu0.b32.end [16/16] %v892_v31, 128 }
 0x12d   : > { %941 = vxpose.xlu1.b32.end [16/16] %v893_v32, 128 }
 0x16b   : > { %v910_v34 = vpop.trf.xlu0 }
 0x16d   : > { %v942_v53 = vpop.trf.xlu1 }
 0x16f   : > { %v911_v36 = vpop.trf.xlu0 }
 0x170   : > { %v958_v37 = vpack.c.bf16 %v911_v36, %v910_v34 }
 0x171   : > { %v943_v56 = vpop.trf.xlu1 }
 0x172   : > { %1103 = vmatmul.mubr.bf16.vlgmr.msra.gmra.mxu1 %v958_v37  ;;  %v966_v8 = vpack.c.bf16 %v943_v56, %v942_v53 }
 0x173   : > { %v912_v39 = vpop.trf.xlu0  ;;  %1112 = vmatprep.mubr.bf16.mxu1 %v3133_v0 }
 0x175   : > { %v944_v59 = vpop.trf.xlu1 }
 0x177   : > { %v913_v41 = vpop.trf.xlu0 }
 0x178   : > { %v959_v42 = vpack.c.bf16 %v913_v41, %v912_v39 }
 0x179   : > { %v945_v62 = vpop.trf.xlu1 }
 0x17a   : > { %1113 = vmatmul.mubr.bf16.gmra.mxu1 %v959_v42  ;;  %v967_v12 = vpack.c.bf16 %v945_v62, %v944_v59 }
 0x17b   : > { %v914_v44 = vpop.trf.xlu0  ;;  %1122 = vmatprep.mubr.bf16.mxu1 %v3133_v0 }
 0x17d   : > { %v946_v3 = vpop.trf.xlu1 }
 0x17f   : > { %v915_v46 = vpop.trf.xlu0 }
 0x180   : > { %v960_v47 = vpack.c.bf16 %v915_v46, %v914_v44 }
 0x181   : > { %v947_v6 = vpop.trf.xlu1 }
 0x182   : > { %1123 = vmatmul.mubr.bf16.gmra.mxu1 %v960_v47  ;;  %v968_v15 = vpack.c.bf16 %v947_v6, %v946_v3 }
 0x183   : > { %v916_v49 = vpop.trf.xlu0  ;;  %1132 = vmatprep.mubr.bf16.mxu1 %v3133_v0 }
 0x185   : > { %v948_v7 = vpop.trf.xlu1 }
 0x187   : > { %v917_v50 = vpop.trf.xlu0 }
 0x188   : > { %v961_v51 = vpack.c.bf16 %v917_v50, %v916_v49 }
 0x189   : > { %v949_v10 = vpop.trf.xlu1 }
 0x18a   : > { %1133 = vmatmul.mubr.bf16.gmra.mxu1 %v961_v51  ;;  %v969_v18 = vpack.c.bf16 %v949_v10, %v948_v7 }
 0x18b   : > { %v918_v52 = vpop.trf.xlu0  ;;  %1142 = vmatprep.mubr.bf16.mxu1 %v3133_v0 }
 0x18d   : > { %v950_v14 = vpop.trf.xlu1 }
 0x18f   : > { %v919_v54 = vpop.trf.xlu0 }
 0x190   : > { %v962_v55 = vpack.c.bf16 %v919_v54, %v918_v52 }
 0x191   : > { %v951_v16 = vpop.trf.xlu1 }
 0x192   : > { %1143 = vmatmul.mubr.bf16.gmra.mxu1 %v962_v55  ;;  %v970_v20 = vpack.c.bf16 %v951_v16, %v950_v14 }
 0x193   : > { %v920_v57 = vpop.trf.xlu0  ;;  %1152 = vmatprep.mubr.bf16.mxu1 %v3133_v0 }
 0x195   : > { %v952_v17 = vpop.trf.xlu1 }
 0x197   : > { %v921_v58 = vpop.trf.xlu0 }
 0x198   : > { %v963_v60 = vpack.c.bf16 %v921_v58, %v920_v57 }
 0x199   : > { %v953_v19 = vpop.trf.xlu1 }
 0x19a   : > { %1153 = vmatmul.mubr.bf16.gmra.mxu1 %v963_v60  ;;  %v971_v22 = vpack.c.bf16 %v953_v19, %v952_v17 }
 0x19b   : > { %v922_v61 = vpop.trf.xlu0  ;;  %1162 = vmatprep.mubr.bf16.mxu1 %v3133_v0 }
 0x19d   : > { %v954_v21 = vpop.trf.xlu1 }
 0x19f   : > { %v923_v63 = vpop.trf.xlu0 }
 0x1a0   : > { %v964_v1 = vpack.c.bf16 %v923_v63, %v922_v61 }
 0x1a1   : > { %v955_v23 = vpop.trf.xlu1 }
 0x1a2   : > { %1163 = vmatmul.mubr.bf16.gmra.mxu1 %v964_v1  ;;  %v972_v25 = vpack.c.bf16 %v955_v23, %v954_v21 }
 0x1a3   : > { %v924_v2 = vpop.trf.xlu0  ;;  %1172 = vmatprep.mubr.bf16.mxu1 %v3133_v0 }
 0x1a5   : > { %v956_v24 = vpop.trf.xlu1 }
 0x1a7   : > { %v925_v4 = vpop.trf.xlu0 }
 0x1a8   : > { %v965_v5 = vpack.c.bf16 %v925_v4, %v924_v2 }
 0x1a9   : > { %v957_v26 = vpop.trf.xlu1 }
 0x1aa   : > { %1173 = vmatmul.mubr.bf16.gmra.mxu1 %v965_v5  ;;  %v973_v27 = vpack.c.bf16 %v957_v26, %v956_v24 }
 0x1ab   : > { %1182 = vmatprep.mubr.bf16.mxu1 %v3133_v0 }
 0x1b2   : > { %1183 = vmatmul.mubr.bf16.gmra.mxu1 %v966_v8 }
 0x1b3   : > { %1192 = vmatprep.mubr.bf16.mxu1 %v3133_v0 }
 0x1ba   : > { %1193 = vmatmul.mubr.bf16.gmra.mxu1 %v967_v12 }
 0x1bb   : > { %1202 = vmatprep.mubr.bf16.mxu1 %v3133_v0 }
 0x1c2   : > { %1203 = vmatmul.mubr.bf16.gmra.mxu1 %v968_v15 }
 0x1c3   : > { %1212 = vmatprep.mubr.bf16.mxu1 %v3133_v0 }
 0x1ca   : > { %1213 = vmatmul.mubr.bf16.gmra.mxu1 %v969_v18 }
 0x1cb   : > { %1222 = vmatprep.mubr.bf16.mxu1 %v3133_v0 }
 0x1d2   : > { %1223 = vmatmul.mubr.bf16.gmra.mxu1 %v970_v20 }
 0x1d3   : > { %1232 = vmatprep.mubr.bf16.mxu1 %v3133_v0 }
 0x1da   : > { %1233 = vmatmul.mubr.bf16.gmra.mxu1 %v971_v22 }
 0x1db   : > { %1242 = vmatprep.mubr.bf16.mxu1 %v3133_v0 }
 0x1e2   : > { %1243 = vmatmul.mubr.bf16.gmra.mxu1 %v972_v25 }
 0x1e3   : > { %1252 = vmatprep.mubr.bf16.mxu1 %v3133_v0 }
 0x1ea   : > { %1253 = vmatmul.mubr.bf16.gmra.mxu1 %v973_v27 }
 0x1eb   : > { %1987 = vmatprep.mubr.bf16.mxu1 %v3133_v0 }
 0x232   : > { %v1104_v28 = vpop.f32.mrf.mxu1 }
 0x233   : > { %v1263_v35 = vmax.f32 %v1104_v28, 0.0 }
 0x234   : > { %v1106_v29 = vpop.f32.mrf.mxu1 }
 0x235   : > { %v1264_v33 = vmax.f32 %v1106_v29, 0.0 }
 0x236   : > { %v1108_v30 = vpop.f32.mrf.mxu1 }
 0x237   : > { %v1265_v31 = vmax.f32 %v1108_v30, 0.0 }
 0x238   : > { %v1110_v32 = vpop.f32.mrf.mxu1 }
 0x239   : > { %v1266_v34 = vmax.f32 %v1110_v32, 0.0  ;;  %v1327_v38 = vpack.c.bf16 %v1265_v31, %v1263_v35 }
 0x23a   : > { %v1114_v36 = vpop.f32.mrf.mxu1 }
 0x23b   : > { %v1328_v37 = vpack.c.bf16 %v1266_v34, %v1264_v33  ;;  %v1267_v45 = vmax.f32 %v1114_v36, 0.0 }
 0x23c   : > { %v1116_v39 = vpop.f32.mrf.mxu1 }
 0x23d   : > { %2775 = vmatprep.mubr.msk.bf16.mxu0 %vm1439_vm2, %v1328_v37  ;;  %v1268_v43 = vmax.f32 %v1116_v39, 0.0 }
 0x23e   : > { %v1118_v40 = vpop.f32.mrf.mxu1  ;;  %1521 = vmatmul.mubr.bf16.vlgmr.msra.gmra.mxu0 %v1327_v38 }
 0x23f   : > { %v1269_v41 = vmax.f32 %v1118_v40, 0.0 }
 0x240   : > { %v1120_v42 = vpop.f32.mrf.mxu1 }
 0x241   : > { %v1270_v44 = vmax.f32 %v1120_v42, 0.0  ;;  %v1329_v48 = vpack.c.bf16 %v1269_v41, %v1267_v45 }
 0x242   : > { %v1124_v46 = vpop.f32.mrf.mxu1 }
 0x243   : > { %v1330_v47 = vpack.c.bf16 %v1270_v44, %v1268_v43  ;;  %v1271_v55 = vmax.f32 %v1124_v46, 0.0 }
 0x244   : > { %v1126_v49 = vpop.f32.mrf.mxu1 }
 0x245   : > { %2776 = vmatprep.mubr.msk.bf16.mxu0 %vm1439_vm2, %v1330_v47  ;;  %v1272_v53 = vmax.f32 %v1126_v49, 0.0 }
 0x246   : > { %v1128_v50 = vpop.f32.mrf.mxu1  ;;  %1529 = vmatmul.mubr.bf16.gmra.mxu0 %v1329_v48 }
 0x247   : > { %v1273_v51 = vmax.f32 %v1128_v50, 0.0 }
 0x248   : > { %v1130_v52 = vpop.f32.mrf.mxu1 }
 0x249   : > { %v1274_v54 = vmax.f32 %v1130_v52, 0.0  ;;  %v1331_v58 = vpack.c.bf16 %v1273_v51, %v1271_v55 }
 0x24a   : > { %v1134_v56 = vpop.f32.mrf.mxu1 }
 0x24b   : > { %v1332_v57 = vpack.c.bf16 %v1274_v54, %v1272_v53  ;;  %v1275_v2 = vmax.f32 %v1134_v56, 0.0 }
 0x24c   : > { %v1136_v59 = vpop.f32.mrf.mxu1 }
 0x24d   : > { %2777 = vmatprep.mubr.msk.bf16.mxu0 %vm1439_vm2, %v1332_v57  ;;  %v1276_v63 = vmax.f32 %v1136_v59, 0.0 }
 0x24e   : > { %v1138_v60 = vpop.f32.mrf.mxu1  ;;  %1537 = vmatmul.mubr.bf16.gmra.mxu0 %v1331_v58 }
 0x24f   : > { %v1277_v61 = vmax.f32 %v1138_v60, 0.0 }
 0x250   : > { %v1140_v62 = vpop.f32.mrf.mxu1 }
 0x251   : > { %v1278_v1 = vmax.f32 %v1140_v62, 0.0  ;;  %v1333_v5 = vpack.c.bf16 %v1277_v61, %v1275_v2 }
 0x252   : > { %v1144_v3 = vpop.f32.mrf.mxu1 }
 0x253   : > { %v1334_v4 = vpack.c.bf16 %v1278_v1, %v1276_v63  ;;  %v1279_v12 = vmax.f32 %v1144_v3, 0.0 }
 0x254   : > { %v1146_v6 = vpop.f32.mrf.mxu1 }
 0x255   : > { %2778 = vmatprep.mubr.msk.bf16.mxu0 %vm1439_vm2, %v1334_v4  ;;  %v1280_v10 = vmax.f32 %v1146_v6, 0.0 }
 0x256   : > { %v1148_v7 = vpop.f32.mrf.mxu1  ;;  %1545 = vmatmul.mubr.bf16.gmra.mxu0 %v1333_v5 }
 0x257   : > { %v1281_v8 = vmax.f32 %v1148_v7, 0.0 }
 0x258   : > { %v1150_v9 = vpop.f32.mrf.mxu1 }
 0x259   : > { %v1282_v11 = vmax.f32 %v1150_v9, 0.0  ;;  %v1335_v15 = vpack.c.bf16 %v1281_v8, %v1279_v12 }
 0x25a   : > { %v1154_v13 = vpop.f32.mrf.mxu1 }
 0x25b   : > { %v1336_v14 = vpack.c.bf16 %v1282_v11, %v1280_v10  ;;  %v1283_v22 = vmax.f32 %v1154_v13, 0.0 }
 0x25c   : > { %v1156_v16 = vpop.f32.mrf.mxu1 }
 0x25d   : > { %2779 = vmatprep.mubr.msk.bf16.mxu0 %vm1439_vm2, %v1336_v14  ;;  %v1284_v20 = vmax.f32 %v1156_v16, 0.0 }
 0x25e   : > { %v1158_v17 = vpop.f32.mrf.mxu1  ;;  %1553 = vmatmul.mubr.bf16.gmra.mxu0 %v1335_v15 }
 0x25f   : > { %v1285_v18 = vmax.f32 %v1158_v17, 0.0 }
 0x260   : > { %v1160_v19 = vpop.f32.mrf.mxu1 }
 0x261   : > { %v1286_v21 = vmax.f32 %v1160_v19, 0.0  ;;  %v1337_v25 = vpack.c.bf16 %v1285_v18, %v1283_v22 }
 0x262   : > { %v1164_v23 = vpop.f32.mrf.mxu1 }
 0x263   : > { %v1338_v24 = vpack.c.bf16 %v1286_v21, %v1284_v20  ;;  %v1287_v32 = vmax.f32 %v1164_v23, 0.0 }
 0x264   : > { %v1166_v26 = vpop.f32.mrf.mxu1 }
 0x265   : > { %2780 = vmatprep.mubr.msk.bf16.mxu0 %vm1439_vm2, %v1338_v24  ;;  %v1288_v30 = vmax.f32 %v1166_v26, 0.0 }
 0x266   : > { %v1168_v27 = vpop.f32.mrf.mxu1  ;;  %1561 = vmatmul.mubr.bf16.gmra.mxu0 %v1337_v25 }
 0x267   : > { %v1289_v28 = vmax.f32 %v1168_v27, 0.0 }
 0x268   : > { %v1170_v29 = vpop.f32.mrf.mxu1 }
 0x269   : > { %v1290_v31 = vmax.f32 %v1170_v29, 0.0  ;;  %v1339_v35 = vpack.c.bf16 %v1289_v28, %v1287_v32 }
 0x26a   : > { %v1174_v33 = vpop.f32.mrf.mxu1 }
 0x26b   : > { %v1340_v34 = vpack.c.bf16 %v1290_v31, %v1288_v30  ;;  %v1291_v42 = vmax.f32 %v1174_v33, 0.0 }
 0x26c   : > { %v1176_v36 = vpop.f32.mrf.mxu1 }
 0x26d   : > { %2781 = vmatprep.mubr.msk.bf16.mxu0 %vm1439_vm2, %v1340_v34  ;;  %v1292_v40 = vmax.f32 %v1176_v36, 0.0  ;;  %v2995_v34 = vld [vmem:[%s3824_s6 + $0x70] ss:$8 sps:$4 sm:$0xff]  }
 0x26e   : > { %v1178_v37 = vpop.f32.mrf.mxu1  ;;  %1569 = vmatmul.mubr.bf16.gmra.mxu0 %v1339_v35  ;;  %v2997_v35 = vld [vmem:[%s3824_s6 + $0x74] ss:$8 sps:$4 sm:$0xff]  }
 0x26f   : > { %v1293_v38 = vmax.f32 %v1178_v37, 0.0  ;;  %1955 = vmatprep.subr.bf16.mxu1 %v2997_v35 }
 0x270   : > { %v1180_v39 = vpop.f32.mrf.mxu1  ;;  %1956 = vmatpush1.bf16.msra.mxu1 %v2995_v34  ;;  %v3015_v34 = vld [vmem:[%s3824_s6 + $0x14] ss:$8 sps:$4 sm:$0xff]  }
 0x271   : > { %v1294_v41 = vmax.f32 %v1180_v39, 0.0  ;;  %v1341_v45 = vpack.c.bf16 %v1293_v38, %v1291_v42 }
 0x272   : > { %v1184_v43 = vpop.f32.mrf.mxu1 }
 0x273   : > { %v1342_v44 = vpack.c.bf16 %v1294_v41, %v1292_v40  ;;  %v1295_v52 = vmax.f32 %v1184_v43, 0.0 }
 0x274   : > { %v1186_v46 = vpop.f32.mrf.mxu1 }
 0x275   : > { %2782 = vmatprep.mubr.msk.bf16.mxu0 %vm1439_vm2, %v1342_v44  ;;  %v1296_v50 = vmax.f32 %v1186_v46, 0.0 }
 0x276   : > { %v1188_v47 = vpop.f32.mrf.mxu1  ;;  %1577 = vmatmul.mubr.bf16.gmra.mxu0 %v1341_v45 }
 0x277   : > { %v1297_v48 = vmax.f32 %v1188_v47, 0.0 }
 0x278   : > { %v1190_v49 = vpop.f32.mrf.mxu1 }
 0x279   : > { %v1298_v51 = vmax.f32 %v1190_v49, 0.0  ;;  %v1343_v55 = vpack.c.bf16 %v1297_v48, %v1295_v52 }
 0x27a   : > { %v1194_v53 = vpop.f32.mrf.mxu1 }
 0x27b   : > { %v1344_v54 = vpack.c.bf16 %v1298_v51, %v1296_v50  ;;  %v1299_v62 = vmax.f32 %v1194_v53, 0.0 }
 0x27c   : > { %v1196_v56 = vpop.f32.mrf.mxu1 }
 0x27d   : > { %2783 = vmatprep.mubr.msk.bf16.mxu0 %vm1439_vm2, %v1344_v54  ;;  %v1300_v60 = vmax.f32 %v1196_v56, 0.0  ;;  %v2998_v56 = vld [vmem:[%s3824_s6 + $0x60] ss:$8 sps:$4 sm:$0xff]  }
 0x27e   : > { %v1198_v57 = vpop.f32.mrf.mxu1  ;;  %1585 = vmatmul.mubr.bf16.gmra.mxu0 %v1343_v55 }
 0x27f   : > { %v1301_v58 = vmax.f32 %v1198_v57, 0.0  ;;  %v3000_v57 = vld [vmem:[%s3824_s6 + $0x64] ss:$8 sps:$4 sm:$0xff]  }
 0x280   : > { %v1200_v59 = vpop.f32.mrf.mxu1  ;;  %1957 = vmatprep.subr.bf16.mxu1 %v3000_v57  ;;  %v3020_v57 = vld [vmem:[%s3781_s9 + $0x30] sm:$0xff]  }
 0x281   : > { %v1302_v61 = vmax.f32 %v1200_v59, 0.0  ;;  %v1345_v2 = vpack.c.bf16 %v1301_v58, %v1299_v62  ;;  %1958 = vmatpush1.bf16.msra.mxu1 %v2998_v56 }
 0x282   : > { %v1204_v63 = vpop.f32.mrf.mxu1 }
 0x283   : > { %v1346_v1 = vpack.c.bf16 %v1302_v61, %v1300_v60  ;;  %v1303_v9 = vmax.f32 %v1204_v63, 0.0 }
 0x284   : > { %v1206_v3 = vpop.f32.mrf.mxu1 }
 0x285   : > { %2784 = vmatprep.mubr.msk.bf16.mxu0 %vm1439_vm2, %v1346_v1  ;;  %v1304_v7 = vmax.f32 %v1206_v3, 0.0  ;;  %v3001_v3 = vld [vmem:[%s3824_s6 + $0x50] ss:$8 sps:$4 sm:$0xff]  }
 0x286   : > { %v1208_v4 = vpop.f32.mrf.mxu1  ;;  %1593 = vmatmul.mubr.bf16.gmra.mxu0 %v1345_v2 }
 0x287   : > { %v1305_v5 = vmax.f32 %v1208_v4, 0.0  ;;  %v3003_v4 = vld [vmem:[%s3824_s6 + $0x54] ss:$8 sps:$4 sm:$0xff]  }
 0x288   : > { %v1210_v6 = vpop.f32.mrf.mxu1  ;;  %1959 = vmatprep.subr.bf16.mxu1 %v3003_v4  ;;  %v3022_v4 = vld [vmem:[%s3781_s9 + $0x20] sm:$0xff]  }
 0x289   : > { %v1306_v8 = vmax.f32 %v1210_v6, 0.0  ;;  %v1347_v12 = vpack.c.bf16 %v1305_v5, %v1303_v9  ;;  %1960 = vmatpush1.bf16.msra.mxu1 %v3001_v3  ;;  %v3004_v5 = vld [vmem:[%s3824_s6 + $0x40] ss:$8 sps:$4 sm:$0xff]   ;;  %v3006_v6 = vld [vmem:[%s3824_s6 + $0x44] ss:$8 sps:$4 sm:$0xff]  }
 0x28a   : > { %v1214_v10 = vpop.f32.mrf.mxu1  ;;  %1961 = vmatprep.subr.bf16.mxu1 %v3006_v6  ;;  %v3010_v9 = vld [vmem:[%s3824_s6 + $0x20] ss:$8 sps:$4 sm:$0xff]  }
 0x28b   : > { %v1348_v11 = vpack.c.bf16 %v1306_v8, %v1304_v7  ;;  %v1307_v19 = vmax.f32 %v1214_v10, 0.0  ;;  %v3007_v7 = vld [vmem:[%s3824_s6 + $0x30] ss:$8 sps:$4 sm:$0xff]   ;;  %v3009_v8 = vld [vmem:[%s3824_s6 + $0x34] ss:$8 sps:$4 sm:$0xff]  }
 0x28c   : > { %v1216_v13 = vpop.f32.mrf.mxu1  ;;  %v3012_v10 = vld [vmem:[%s3824_s6 + $0x24] ss:$8 sps:$4 sm:$0xff]  }
 0x28d   : > { %2785 = vmatprep.mubr.msk.bf16.mxu0 %vm1439_vm2, %v1348_v11  ;;  %v1308_v17 = vmax.f32 %v1216_v13, 0.0  ;;  %1962 = vmatpush1.bf16.msra.mxu1 %v3004_v5 }
 0x28e   : > { %v1218_v14 = vpop.f32.mrf.mxu1  ;;  %1601 = vmatmul.mubr.bf16.gmra.mxu0 %v1347_v12  ;;  %1963 = vmatprep.subr.bf16.mxu1 %v3009_v8 }
 0x28f   : > { %v1309_v15 = vmax.f32 %v1218_v14, 0.0 }
 0x290   : > { %v1220_v16 = vpop.f32.mrf.mxu1 }
 0x291   : > { %v1310_v18 = vmax.f32 %v1220_v16, 0.0  ;;  %v1349_v22 = vpack.c.bf16 %v1309_v15, %v1307_v19  ;;  %1964 = vmatpush1.bf16.msra.mxu1 %v3007_v7 }
 0x292   : > { %v1224_v20 = vpop.f32.mrf.mxu1  ;;  %1965 = vmatprep.subr.bf16.mxu1 %v3012_v10 }
 0x293   : > { %v1350_v21 = vpack.c.bf16 %v1310_v18, %v1308_v17  ;;  %v1311_v29 = vmax.f32 %v1224_v20, 0.0 }
 0x294   : > { %v1226_v23 = vpop.f32.mrf.mxu1 }
 0x295   : > { %2786 = vmatprep.mubr.msk.bf16.mxu0 %vm1439_vm2, %v1350_v21  ;;  %v1312_v27 = vmax.f32 %v1226_v23, 0.0  ;;  %1966 = vmatpush1.bf16.msra.mxu1 %v3010_v9  ;;  %v3023_v9 = vld [vmem:[%s3781_s9 + $0x18] sm:$0xff]  }
 0x296   : > { %v1228_v24 = vpop.f32.mrf.mxu1  ;;  %1609 = vmatmul.mubr.bf16.gmra.mxu0 %v1349_v22  ;;  %1967 = vmatprep.subr.bf16.mxu1 %v3015_v34 }
 0x297   : > { %v1313_v25 = vmax.f32 %v1228_v24, 0.0 }
 0x298   : > { %v1230_v26 = vpop.f32.mrf.mxu1 }
 0x299   : > { %v1314_v28 = vmax.f32 %v1230_v26, 0.0  ;;  %v1351_v32 = vpack.c.bf16 %v1313_v25, %v1311_v29 }
 0x29a   : > { %v1234_v30 = vpop.f32.mrf.mxu1 }
 0x29b   : > { %v1352_v31 = vpack.c.bf16 %v1314_v28, %v1312_v27  ;;  %v1315_v41 = vmax.f32 %v1234_v30, 0.0 }
 0x29c   : > { %v1236_v33 = vpop.f32.mrf.mxu1 }
 0x29d   : > { %2787 = vmatprep.mubr.msk.bf16.mxu0 %vm1439_vm2, %v1352_v31  ;;  %v1316_v39 = vmax.f32 %v1236_v33, 0.0  ;;  %v3013_v33 = vld [vmem:[%s3824_s6 + $0x10] ss:$8 sps:$4 sm:$0xff]  }
 0x29e   : > { %v1238_v36 = vpop.f32.mrf.mxu1  ;;  %1617 = vmatmul.mubr.bf16.gmra.mxu0 %v1351_v32  ;;  %1968 = vmatpush1.bf16.msra.mxu1 %v3013_v33 }
 0x29f   : > { %v1317_v37 = vmax.f32 %v1238_v36, 0.0  ;;  %v3018_v36 = vld [vmem:[%s3824_s6 + $0x4] ss:$8 sps:$4 sm:$0xff]  }
 0x2a0   : > { %v1240_v38 = vpop.f32.mrf.mxu1  ;;  %1969 = vmatprep.subr.bf16.mxu1 %v3018_v36 }
 0x2a1   : > { %v1318_v40 = vmax.f32 %v1240_v38, 0.0  ;;  %v1353_v44 = vpack.c.bf16 %v1317_v37, %v1315_v41 }
 0x2a2   : > { %v1244_v42 = vpop.f32.mrf.mxu1 }
 0x2a3   : > { %v1354_v43 = vpack.c.bf16 %v1318_v40, %v1316_v39  ;;  %v1319_v51 = vmax.f32 %v1244_v42, 0.0  ;;  %v3016_v39 = vld [vmem:[%s3824_s6] ss:$8 sps:$4 sm:$0xff]   ;;  %s3071_s6 = scalar_lea.vmem %s2672_s26, 16 }
 0x2a4   : > { %v1246_v45 = vpop.f32.mrf.mxu1  ;;  %1970 = vmatpush1.bf16.msra.mxu1 %v3016_v39  ;;  %p3072_p11 = scmp.ne.s32.totalorder %s2672_s26, %s3071_s6 }
 0x2a5   : > { %2788 = vmatprep.mubr.msk.bf16.mxu0 %vm1439_vm2, %v1354_v43  ;;  %v1320_v49 = vmax.f32 %v1246_v45, 0.0 }
 0x2a6   : > { %v1248_v46 = vpop.f32.mrf.mxu1  ;;  %1625 = vmatmul.mubr.bf16.gmra.mxu0 %v1353_v44  ;;  %p3073_p12 = pnand %p3072_p11, %p3285_p5 }
 0x2a7   : > { %v1321_v47 = vmax.f32 %v1248_v46, 0.0 }
 0x2a8   : > { %v1250_v48 = vpop.f32.mrf.mxu1  ;;  %p3074_p13 = pneg %p3073_p12 }
 0x2a9   : > { %v1322_v50 = vmax.f32 %v1250_v48, 0.0  ;;  %v1355_v54 = vpack.c.bf16 %v1321_v47, %v1319_v51 }
 0x2aa   : > { %v1254_v52 = vpop.f32.mrf.mxu1 }
 0x2ab   : > { %v1356_v53 = vpack.c.bf16 %v1322_v50, %v1320_v49  ;;  %v1323_v63 = vmax.f32 %v1254_v52, 0.0 }
 0x2ac   : > { %v1256_v55 = vpop.f32.mrf.mxu1 }
 0x2ad   : > { %2789 = vmatprep.mubr.msk.bf16.mxu0 %vm1439_vm2, %v1356_v53  ;;  %v1324_v61 = vmax.f32 %v1256_v55, 0.0 }
 0x2ae   : > { %v1258_v58 = vpop.f32.mrf.mxu1  ;;  %1633 = vmatmul.mubr.bf16.gmra.mxu0 %v1355_v54  ;;  %v3019_v54 = vld [vmem:[%s3781_s9 + $0x38] sm:$0xff]  }
 0x2af   : > { %v1325_v59 = vmax.f32 %v1258_v58, 0.0  ;;  %2120 = vmatpush1.bf16.msra.mxu0 %v3019_v54 }
 0x2b0   : > { %v1260_v60 = vpop.f32.mrf.mxu1  ;;  %2121 = vmatprep.subr.bf16.mxu0 %v3133_v0 }
 0x2b1   : > { %v1326_v62 = vmax.f32 %v1260_v60, 0.0  ;;  %v1357_v2 = vpack.c.bf16 %v1325_v59, %v1323_v63 }
 0x2b3   : > { %v1358_v1 = vpack.c.bf16 %v1326_v62, %v1324_v61  ;;  %2122 = vmatpush1.bf16.msra.mxu0 %v3020_v57  ;;  %v3021_v62 = vld [vmem:[%s3781_s9 + $0x28] sm:$0xff]  }
 0x2b4   : > { %2123 = vmatprep.subr.bf16.mxu0 %v3133_v0 }
 0x2b5   : > { %2790 = vmatprep.mubr.msk.bf16.mxu0 %vm1439_vm2, %v1358_v1 }
 0x2b6   : > { %1641 = vmatmul.mubr.bf16.gmra.mxu0 %v1357_v2 }
 0x2b7   : > { %2124 = vmatpush1.bf16.msra.mxu0 %v3021_v62 }
 0x2b8   : > { %2125 = vmatprep.subr.bf16.mxu0 %v3133_v0 }
 0x2bb   : > { %2126 = vmatpush1.bf16.msra.mxu0 %v3022_v4 }
 0x2bc   : > { %2127 = vmatprep.subr.bf16.mxu0 %v3133_v0 }
 0x2bf   : > { %2128 = vmatpush1.bf16.msra.mxu0 %v3023_v9 }
 0x2c0   : > { %2129 = vmatprep.subr.bf16.mxu0 %v3133_v0 }
 0x2fe   : > { %v1522_v11 = vpop.f32.mrf.mxu0 }
 0x2ff   : > { %v1649_v16 = vmax.f32 %v1522_v11, 0.0 }
 0x300   : > { %v1524_v12 = vpop.f32.mrf.mxu0 }
 0x302   : > { %v1525_v13 = vpop.f32.mrf.mxu0 }
 0x303   : > { %v1650_v21 = vmax.f32 %v1525_v13, 0.0  ;;  %v3024_v13 = vld [vmem:[%s3781_s9 + $0x10] sm:$0xff]  }
 0x304   : > { %v1527_v14 = vpop.f32.mrf.mxu0  ;;  %2130 = vmatpush1.bf16.msra.mxu0 %v3024_v13 }
 0x305   : > { %2131 = vmatprep.subr.bf16.mxu0 %v3133_v0 }
 0x306   : > { %v1530_v15 = vpop.f32.mrf.mxu0 }
 0x307   : > { %v1651_v17 = vmax.f32 %v1530_v15, 0.0 }
 0x308   : > { %v1532_v18 = vpop.f32.mrf.mxu0 }
 0x309   : > { %v1681_v19 = vadd.f32 %v1651_v17, %v1649_v16  ;;  %v3025_v16 = vld [vmem:[%s3781_s9 + $0x8] sm:$0xff]  }
 0x30a   : > { %v1533_v20 = vpop.f32.mrf.mxu0  ;;  %2132 = vmatpush1.bf16.msra.mxu0 %v3025_v16 }
 0x30b   : > { %v1652_v22 = vmax.f32 %v1533_v20, 0.0  ;;  %2133 = vmatprep.subr.bf16.mxu0 %v3133_v0 }
 0x30c   : > { %v1535_v23 = vpop.f32.mrf.mxu0 }
 0x30d   : > { %v1682_v24 = vadd.f32 %v1652_v22, %v1650_v21  ;;  %v3027_v22 = vld [vmem:[%s3781_s9 + $0x48] sm:$0xff]  }
 0x30e   : > { %v1538_v25 = vpop.f32.mrf.mxu0 }
 0x30f   : > { %v1653_v26 = vmax.f32 %v1538_v25, 0.0 }
 0x310   : > { %v1540_v27 = vpop.f32.mrf.mxu0 }
 0x311   : > { %v1683_v28 = vadd.f32 %v1681_v19, %v1653_v26  ;;  %v3026_v19 = vld [vmem:[%s3781_s9] sm:$0xff]  }
 0x312   : > { %v1541_v29 = vpop.f32.mrf.mxu0  ;;  %2134 = vmatpush1.bf16.msra.mxu0 %v3026_v19 }
 0x313   : > { %v1654_v30 = vmax.f32 %v1541_v29, 0.0  ;;  %2147 = vmatprep.subr.bf16.mxu0 %v3133_v0 }
 0x314   : > { %v1543_v31 = vpop.f32.mrf.mxu0 }
 0x315   : > { %v1684_v32 = vadd.f32 %v1682_v24, %v1654_v30 }
 0x316   : > { %v1546_v35 = vpop.f32.mrf.mxu0  ;;  %2148 = vmatpush2.bf16.msra.mxu0 %v3027_v22 }
 0x317   : > { %v1655_v37 = vmax.f32 %v1546_v35, 0.0  ;;  %2149 = vmatprep.subr.bf16.mxu0 %v3133_v0 }
 0x318   : > { %v1548_v38 = vpop.f32.mrf.mxu0 }
 0x319   : > { %v1685_v40 = vadd.f32 %v1683_v28, %v1655_v37 }
 0x31a   : > { %v1549_v41 = vpop.f32.mrf.mxu0 }
 0x31b   : > { %v1656_v42 = vmax.f32 %v1549_v41, 0.0 }
 0x31c   : > { %v1551_v43 = vpop.f32.mrf.mxu0 }
 0x31d   : > { %v1686_v44 = vadd.f32 %v1684_v32, %v1656_v42 }
 0x31e   : > { %v1554_v45 = vpop.f32.mrf.mxu0 }
 0x31f   : > { %v1657_v46 = vmax.f32 %v1554_v45, 0.0 }
 0x320   : > { %v1556_v47 = vpop.f32.mrf.mxu0 }
 0x321   : > { %v1687_v48 = vadd.f32 %v1685_v40, %v1657_v46 }
 0x322   : > { %v1557_v49 = vpop.f32.mrf.mxu0 }
 0x323   : > { %v1658_v50 = vmax.f32 %v1557_v49, 0.0 }
 0x324   : > { %v1559_v51 = vpop.f32.mrf.mxu0 }
 0x325   : > { %v1688_v52 = vadd.f32 %v1686_v44, %v1658_v50 }
 0x326   : > { %v1562_v53 = vpop.f32.mrf.mxu0 }
 0x327   : > { %v1659_v55 = vmax.f32 %v1562_v53, 0.0 }
 0x328   : > { %v1564_v56 = vpop.f32.mrf.mxu0 }
 0x329   : > { %v1689_v58 = vadd.f32 %v1687_v48, %v1659_v55 }
 0x32a   : > { %v1565_v59 = vpop.f32.mrf.mxu0 }
 0x32b   : > { %v1660_v60 = vmax.f32 %v1565_v59, 0.0 }
 0x32c   : > { %v1567_v61 = vpop.f32.mrf.mxu0 }
 0x32d   : > { %v1690_v63 = vadd.f32 %v1688_v52, %v1660_v60 }
 0x32e   : > { %v1570_v1 = vpop.f32.mrf.mxu0 }
 0x32f   : > { %v1661_v2 = vmax.f32 %v1570_v1, 0.0 }
 0x330   : > { %v1572_v3 = vpop.f32.mrf.mxu0 }
 0x331   : > { %v1691_v5 = vadd.f32 %v1689_v58, %v1661_v2 }
 0x332   : > { %v1573_v6 = vpop.f32.mrf.mxu0 }
 0x333   : > { %v1662_v7 = vmax.f32 %v1573_v6, 0.0 }
 0x334   : > { %v1575_v8 = vpop.f32.mrf.mxu0 }
 0x335   : > { %v1692_v10 = vadd.f32 %v1690_v63, %v1662_v7 }
 0x336   : > { %v1578_v11 = vpop.f32.mrf.mxu0 }
 0x337   : > { %v1663_v39 = vmax.f32 %v1578_v11, 0.0 }
 0x338   : > { %v1580_v12 = vpop.f32.mrf.mxu0 }
 0x339   : > { %v1693_v43 = vadd.f32 %v1691_v5, %v1663_v39 }
 0x33a   : > { %v1581_v14 = vpop.f32.mrf.mxu0 }
 0x33b   : > { %v1664_v45 = vmax.f32 %v1581_v14, 0.0 }
 0x33c   : > { %v1583_v15 = vpop.f32.mrf.mxu0 }
 0x33d   : > { %v1694_v53 = vadd.f32 %v1692_v10, %v1664_v45 }
 0x33e   : > { %v1586_v17 = vpop.f32.mrf.mxu0 }
 0x33f   : > { %v1665_v41 = vmax.f32 %v1586_v17, 0.0 }
 0x340   : > { %v1588_v18 = vpop.f32.mrf.mxu0 }
 0x341   : > { %v1695_v47 = vadd.f32 %v1693_v43, %v1665_v41 }
 0x342   : > { %v1589_v20 = vpop.f32.mrf.mxu0 }
 0x343   : > { %v1666_v49 = vmax.f32 %v1589_v20, 0.0 }
 0x344   : > { %v1591_v21 = vpop.f32.mrf.mxu0 }
 0x345   : > { %v1696_v58 = vadd.f32 %v1694_v53, %v1666_v49 }
 0x346   : > { %v1594_v23 = vpop.f32.mrf.mxu0 }
 0x347   : > { %v1667_v44 = vmax.f32 %v1594_v23, 0.0 }
 0x348   : > { %v1596_v24 = vpop.f32.mrf.mxu0 }
 0x349   : > { %v1697_v51 = vadd.f32 %v1695_v47, %v1667_v44 }
 0x34a   : > { %v1597_v25 = vpop.f32.mrf.mxu0 }
 0x34b   : > { %v1668_v54 = vmax.f32 %v1597_v25, 0.0 }
 0x34c   : > { %v1599_v26 = vpop.f32.mrf.mxu0 }
 0x34d   : > { %v1698_v63 = vadd.f32 %v1696_v58, %v1668_v54 }
 0x34e   : > { %v1602_v27 = vpop.f32.mrf.mxu0 }
 0x34f   : > { %v1669_v48 = vmax.f32 %v1602_v27, 0.0 }
 0x350   : > { %v1604_v28 = vpop.f32.mrf.mxu0 }
 0x351   : > { %v1699_v56 = vadd.f32 %v1697_v51, %v1669_v48 }
 0x352   : > { %v1605_v29 = vpop.f32.mrf.mxu0 }
 0x353   : > { %v1670_v59 = vmax.f32 %v1605_v29, 0.0 }
 0x354   : > { %v1607_v30 = vpop.f32.mrf.mxu0 }
 0x355   : > { %v1700_v5 = vadd.f32 %v1698_v63, %v1670_v59 }
 0x356   : > { %v1610_v31 = vpop.f32.mrf.mxu0 }
 0x357   : > { %v1671_v52 = vmax.f32 %v1610_v31, 0.0 }
 0x358   : > { %v1612_v32 = vpop.f32.mrf.mxu0 }
 0x359   : > { %v1701_v61 = vadd.f32 %v1699_v56, %v1671_v52 }
 0x35a   : > { %v1613_v33 = vpop.f32.mrf.mxu0 }
 0x35b   : > { %v1672_v1 = vmax.f32 %v1613_v33, 0.0 }
 0x35c   : > { %v1615_v34 = vpop.f32.mrf.mxu0 }
 0x35d   : > { %v1702_v9 = vadd.f32 %v1700_v5, %v1672_v1 }
 0x35e   : > { %v1618_v35 = vpop.f32.mrf.mxu0 }
 0x35f   : > { %v1673_v57 = vmax.f32 %v1618_v35, 0.0 }
 0x360   : > { %v1620_v36 = vpop.f32.mrf.mxu0 }
 0x361   : > { %v1703_v3 = vadd.f32 %v1701_v61, %v1673_v57 }
 0x362   : > { %v1621_v37 = vpop.f32.mrf.mxu0 }
 0x363   : > { %v1674_v6 = vmax.f32 %v1621_v37, 0.0 }
 0x364   : > { %v1623_v38 = vpop.f32.mrf.mxu0 }
 0x365   : > { %v1704_v14 = vadd.f32 %v1702_v9, %v1674_v6 }
 0x366   : > { %v1626_v40 = vpop.f32.mrf.mxu0 }
 0x367   : > { %v1675_v62 = vmax.f32 %v1626_v40, 0.0 }
 0x368   : > { %v1628_v42 = vpop.f32.mrf.mxu0 }
 0x369   : > { %v1705_v8 = vadd.f32 %v1703_v3, %v1675_v62 }
 0x36a   : > { %v1629_v46 = vpop.f32.mrf.mxu0 }
 0x36b   : > { %v1676_v10 = vmax.f32 %v1629_v46, 0.0 }
 0x36c   : > { %v1631_v50 = vpop.f32.mrf.mxu0 }
 0x36d   : > { %v1706_v18 = vadd.f32 %v1704_v14, %v1676_v10 }
 0x36e   : > { %v1634_v55 = vpop.f32.mrf.mxu0 }
 0x36f   : > { %v1677_v4 = vmax.f32 %v1634_v55, 0.0 }
 0x370   : > { %v1636_v60 = vpop.f32.mrf.mxu0 }
 0x371   : > { %v1707_v12 = vadd.f32 %v1705_v8, %v1677_v4 }
 0x372   : > { %v1637_v2 = vpop.f32.mrf.mxu0 }
 0x373   : > { %v1678_v15 = vmax.f32 %v1637_v2, 0.0 }
 0x374   : > { %v1639_v7 = vpop.f32.mrf.mxu0 }
 0x375   : > { %v1708_v22 = vadd.f32 %v1706_v18, %v1678_v15 }
 0x376   : > { %v1642_v11 = vpop.f32.mrf.mxu0 }
 0x377   : > { %v1679_v13 = vmax.f32 %v1642_v11, 0.0 }
 0x378   : > { %v1644_v16 = vpop.f32.mrf.mxu0 }
 0x379   : > { %v1709_v17 = vadd.f32 %v1707_v12, %v1679_v13 }
 0x37a   : > { %v1645_v19 = vpop.f32.mrf.mxu0 }
 0x37b   : > { %v1711_v20 = vmul.f32 0.0625, %v1709_v17  ;;  %v1680_v21 = vmax.f32 %v1645_v19, 0.0 }
 0x37c   : > { %v1647_v23 = vpop.f32.mrf.mxu0 }
 0x37d   : > { %v1714_v24 = vsel %vm1713_vm3, %v1711_v20, 0.0  ;;  %v1724_v25 = vrot.slane %v1711_v20, 1  ;;  %v1734_v26 = vrot.slane %v1711_v20, 2  ;;  %v1746_v27 = vrot.slane %v1711_v20, 4 }
 0x37e   : > { %v1715_v28 = vrot.slane %v1714_v24, 4  ;;  %v1756_v29 = vrot.slane %v1711_v20, 5  ;;  %v1710_v30 = vadd.f32 %v1708_v22, %v1680_v21  ;;  %v1768_v39 = vrot.slane %v1711_v20, 7 }
 0x37f   : > { %v1726_v31 = vsel %vm1713_vm3, %v1724_v25, 0.0  ;;  %v1737_v32 = vsel %vm1736_vm4, %v1734_v26, 0.0  ;;  %v1748_v33 = vsel %vm1713_vm3, %v1746_v27, 0.0 }
 0x380   : > { %v1716_v34 = vadd.f32 %v1715_v28, %v1714_v24  ;;  %v1727_v35 = vrot.slane %v1726_v31, 4  ;;  %v1738_v36 = vrot.slane %v1737_v32, 4  ;;  %v1749_v37 = vrot.slane %v1748_v33, 4 }
 0x381   : > { %v1758_v38 = vsel %vm1736_vm4, %v1756_v29, 0.0  ;;  %v1712_v40 = vmul.f32 0.0625, %v1710_v30 }
 0x382   : > { %v1717_v41 = vrot.slane %v1716_v34, 2  ;;  %v1728_v42 = vadd.f32 %v1727_v35, %v1726_v31  ;;  %v1739_v43 = vadd.f32 %v1738_v36, %v1737_v32  ;;  %v1750_v44 = vadd.f32 %v1749_v37, %v1748_v33 }
 0x383   : > { %v1759_v45 = vrot.slane %v1758_v38, 4  ;;  %v1769_v46 = vrot.slane %v1712_v40, 7  ;;  %v1780_v47 = vsel %vm1736_vm4, %v1712_v40, 0.0  ;;  %v1788_v48 = vrot.slane %v1712_v40, 2 }
 0x384   : > { %v1718_v49 = vadd.f32 %v1717_v41, %v1716_v34  ;;  %v1729_v50 = vrot.slane %v1728_v42, 2  ;;  %v1740_v51 = vrot.slane %v1739_v43, 2  ;;  %v1751_v52 = vrot.slane %v1750_v44, 2 }
 0x385   : > { %v1760_v53 = vadd.f32 %v1759_v45, %v1758_v38  ;;  %v1770_v54 = vsel %vm1767_vm5, %v1768_v39, %v1769_v46  ;;  %v1781_v55 = vrot.slane %v1780_v47, 4  ;;  %v1790_v56 = vsel %vm1713_vm3, %v1788_v48, 0.0 }
 0x386   : > { %v1719_v57 = vrot.slane %v1718_v49, 1  ;;  %v1730_v58 = vadd.f32 %v1729_v50, %v1728_v42  ;;  %v1741_v59 = vadd.f32 %v1740_v51, %v1739_v43  ;;  %v1752_v60 = vadd.f32 %v1751_v52, %v1750_v44 }
 0x387   : > { %v1761_v61 = vrot.slane %v1760_v53, 2  ;;  %v1772_v62 = vsel %vm1713_vm3, %v1770_v54, 0.0  ;;  %v1782_v63 = vadd.f32 %v1781_v55, %v1780_v47  ;;  %v1791_v1 = vrot.slane %v1790_v56, 4 }
 0x388   : > { %v1720_v2 = vadd.f32 %v1719_v57, %v1718_v49  ;;  %v1731_v3 = vrot.slane %v1730_v58, 1  ;;  %v1742_v4 = vrot.slane %v1741_v59, 1  ;;  %v1753_v5 = vrot.slane %v1752_v60, 1 }
 0x389   : > { %v1762_v6 = vadd.f32 %v1761_v61, %v1760_v53  ;;  %v1773_v7 = vrot.slane %v1772_v62, 4  ;;  %v1783_v8 = vrot.slane %v1782_v63, 2  ;;  %v1792_v12 = vadd.f32 %v1791_v1, %v1790_v56 }
 0x38a   : > { %v1732_v9 = vadd.f32 %v1731_v3, %v1730_v58  ;;  %v1743_v10 = vadd.f32 %v1742_v4, %v1741_v59  ;;  %v1754_v11 = vadd.f32 %v1753_v5, %v1752_v60  ;;  %v1798_v16 = vrot.slane %v1712_v40, 3  ;;  %v2791_v5 = vld [vmem:[%s3825_s30] ss:$0 sm:$0xff]  ;;  %s3737_s30 = scalar_lea.hbm %s3793_s21, %s2860_s0 }
 0x38b   : > { %v1763_v13 = vrot.slane %v1762_v6, 1  ;;  %v1774_v14 = vadd.f32 %v1773_v7, %v1772_v62  ;;  %v1784_v15 = vadd.f32 %v1783_v8, %v1782_v63  ;;  %v1722_v17 = vmul.f32 0.5, %v1720_v2 }
 0x38c   : > { %v1733_v18 = vmul.f32 0.5, %v1732_v9  ;;  %v1745_v19 = vmul.f32 0.33333334, %v1743_v10  ;;  %v1808_v20 = vrot.slane %v1712_v40, 5  ;;  %v1800_v24 = vsel %vm1736_vm4, %v1798_v16, 0.0  ;;  %v3029_v16 = vld [vmem:[%s3784_s12 + $0x28] sm:$0xff]  }
 0x38d   : > { %v1764_v21 = vadd.f32 %v1763_v13, %v1762_v6  ;;  %v1775_v22 = vrot.slane %v1774_v14, 2  ;;  %v1785_v23 = vrot.slane %v1784_v15, 1  ;;  %v1801_v25 = vrot.slane %v1800_v24, 4  ;;  %v2792_v10 = vld [vmem:[%s3826_s1] ss:$0 sm:$0xff]  ;;  %s3075_s1 = sshll.u32 %s3136_s3, 4  ;;  %s3076_s1 = int_to_ptr.vmem [resolvable:$false] %s3075_s1 }
 0x38e   : > { %v1810_v26 = vsel %vm1713_vm3, %v1808_v20, 0.0  ;;  %v1818_v27 = vrot.slane %v1712_v40, 6  ;;  %v1793_v28 = vrot.slane %v1792_v12, 2  ;;  %v1755_v29 = vmul.f32 0.5, %v1754_v11  ;;  %s3077_s24 = scalar_lea.vmem %s3076_s1, 32  ;;  %p3078_p0 = scmp.lt.s32.totalorder %s2672_s26, %s3076_s1 }
 0x38f   : > { %v1811_v30 = vrot.slane %v1810_v26, 4  ;;  %v1776_v31 = vadd.f32 %v1775_v22, %v1774_v14  ;;  %v1802_v32 = vadd.f32 %v1801_v25, %v1800_v24  ;;  %v1828_v35 = vsel %vm1767_vm5, %v1722_v17, %v1733_v18  ;;  %v3030_v18 = vld [vmem:[%s3784_s12 + $0x20] sm:$0xff]   ;;  %p3079_p1 = scmp.lt.s32.totalorder %s3077_s24, %s3071_s6 }
 0x390   : > { %v1820_v33 = vsel %vm1713_vm3, %v1818_v27, 0.0  ;;  %v1794_v34 = vadd.f32 %v1793_v28, %v1792_v12  ;;  %v1765_v38 = vmul.f32 0.33333334, %v1764_v21  ;;  %v1786_v42 = vadd.f32 %v1785_v23, %v1784_v15  ;;  %v3028_v15 = vld [vmem:[%s3781_s9 + $0x40] sm:$0xff]  }
 0x391   : > { %v1812_v36 = vadd.f32 %v1811_v30, %v1810_v26  ;;  %v1821_v37 = vrot.slane %v1820_v33, 4  ;;  %v1777_v39 = vrot.slane %v1776_v31, 1  ;;  %v1803_v41 = vrot.slane %v1802_v32, 2  ;;  %2150 = vmatpush2.bf16.msra.mxu0 %v3028_v15  ;;  %v2002_v25 = vld [vmem:[%s3827_s7] sm:$0x3]  ;;  %p3080_p2 = por %p3079_p1, %p3078_p0 }
 0x392   : > { %v1795_v43 = vrot.slane %v1794_v34, 1  ;;  %v1829_v40 = vsel %vm1713_vm3, %v1828_v35, %v1745_v19  ;;  %v1787_v54 = vmul.f32 0.33333334, %v1786_v42  ;;  %v3134_v17 = vmov 0.0   ;;  %v3031_v19 = vld [vmem:[%s3784_s12 + $0x18] sm:$0xff]  }
 0x393   : > { %v1813_v44 = vrot.slane %v1812_v36, 2  ;;  %v1822_v45 = vadd.f32 %v1821_v37, %v1820_v33  ;;  %v1778_v46 = vadd.f32 %v1777_v39, %v1776_v31  ;;  %v1830_v47 = vsel %vm1736_vm4, %v1829_v40, %v1755_v29  ;;  %2893 = vmatprep.subr.bf16.mxu1 %v3134_v17  ;;  %p3081_p3 = pnand %p3080_p2, %p3074_p13 }
 0x394   : > { %v1804_v48 = vadd.f32 %v1803_v41, %v1802_v32  ;;  %v1796_v49 = vadd.f32 %v1795_v43, %v1794_v34  ;;  %v1832_v50 = vsel %vm1831_vm6, %v1830_v47, %v1765_v38  ;;  %v2004_v20 = vlaneseq  ;;  %v2018_v32 = vld [vmem:[%s3780_s8] sm:$0x3] }
 0x395   : > { %v1814_v51 = vadd.f32 %v1813_v44, %v1812_v36  ;;  %v1779_v52 = vmul.f32 0.5, %v1778_v46  ;;  %v1823_v53 = vrot.slane %v1822_v45, 2 }
 0x396   : > { %v1805_v55 = vrot.slane %v1804_v48, 1  ;;  %v1797_v56 = vmul.f32 0.5, %v1796_v49  ;;  %v2005_v21 = vshrl.u32 %v2004_v20, 7  ;;  %v3033_v49 = vld [vmem:[%s3784_s12 + $0x8] sm:$0xff]  }
 0x397   : > { %v1815_v57 = vrot.slane %v1814_v51, 1  ;;  %v1824_v58 = vadd.f32 %v1823_v53, %v1822_v45  ;;  %v1833_v59 = vsel %vm742_vm0, %v1832_v50, %v1779_v52  ;;  %v3034_v50 = vld [vmem:[%s3784_s12] sm:$0xff]  }
 0x398   : > { %v1806_v60 = vadd.f32 %v1805_v55, %v1804_v48  ;;  %v1835_v61 = vsel %vm1834_vm7, %v1833_v59, %v1787_v54  ;;  %v3586_v22 = vsub.s32 1, %v2005_v21  ;;  %v3588_v24 = vsub.s32 0, %v2005_v21  ;;  %v3032_v48 = vld [vmem:[%s3784_s12 + $0x10] sm:$0xff]   ;;  %v2820_v53 = vld [vmem:[%s3782_s10] ss:$0 sm:$0xff] }
 0x399   : > { %v1816_v62 = vadd.f32 %v1815_v57, %v1814_v51  ;;  %v1825_v63 = vrot.slane %v1824_v58, 1  ;;  %v1837_v1 = vsel %vm1836_vm8, %v1835_v61, %v1797_v56 }
 0x39a   : > { %v1807_v2 = vmul.f32 0.33333334, %v1806_v60  ;;  %v1847_v6 = vmul.f32 %v2791_v5, %v1837_v1  ;;  %v2011_v28 = vrot.slane %v2002_v25, %v3586_v22  ;;  %v2007_v30 = vrot.slane %v2002_v25, %v3588_v24  ;;  %v3037_v1 = vld [vmem:[%s3787_s15 + $0x54] ss:$8 sps:$4 sm:$0xff]  }
 0x39b   : > { %v1817_v3 = vmul.f32 0.5, %v1816_v62  ;;  %v1826_v4 = vadd.f32 %v1825_v63, %v1824_v58  ;;  %v2027_v36 = vrot.slane %v2018_v32, %v3586_v22  ;;  %v2023_v41 = vrot.slane %v2018_v32, %v3588_v24  ;;  %v2821_v58 = vld [vmem:[%s3783_s11] ss:$0 sm:$0xff] }
 0x39c   : > { %v1856_v12 = vadd.f32 %v2792_v10, %v1847_v6  ;;  %v3046_v6 = vld [vmem:[%s3787_s15 + $0x24] ss:$8 sps:$4 sm:$0xff]  }
 0x39d   : > { %v1827_v7 = vmul.f32 0.5, %v1826_v4  ;;  %v1838_v8 = vsel %vm1767_vm5, %v1807_v2, %v1817_v3  ;;  %v3035_v2 = vld [vmem:[%s3787_s15 + $0x50] ss:$8 sps:$4 sm:$0xff]   ;;  %v3040_v3 = vld [vmem:[%s3787_s15 + $0x44] ss:$8 sps:$4 sm:$0xff]  }
 0x39e   : > { %v3038_v4 = vld [vmem:[%s3787_s15 + $0x40] ss:$8 sps:$4 sm:$0xff]  }
 0x39f   : > { %v1839_v9 = vsel %vm1713_vm3, %v1838_v8, %v1827_v7  ;;  %v3044_v7 = vld [vmem:[%s3787_s15 + $0x20] ss:$8 sps:$4 sm:$0xff]   ;;  %v3047_v8 = vld [vmem:[%s3787_s15 + $0x10] ss:$8 sps:$4 sm:$0xff]  }
 0x3a0   : > { %v1848_v11 = vmul.f32 %v2791_v5, %v1839_v9  ;;  %v3041_v5 = vld [vmem:[%s3787_s15 + $0x30] ss:$8 sps:$4 sm:$0xff]   ;;  %v3049_v9 = vld [vmem:[%s3787_s15 + $0x14] ss:$8 sps:$4 sm:$0xff]  }
 0x3a2   : > { %v1857_v13 = vadd.f32 %v2792_v10, %v1848_v11  ;;  %v3052_v10 = vld [vmem:[%s3787_s15 + $0x4] ss:$8 sps:$4 sm:$0xff]   ;;  %v3050_v11 = vld [vmem:[%s3787_s15] ss:$8 sps:$4 sm:$0xff]  }
 0x3a4   : > { %v1858_v14 = vpack.c.bf16 %v1857_v13, %v1856_v12  ;;  %v2829_v13 = vld [vmem:[%s3785_s13] ss:$0 sm:$0xff] }
 0x3a6   : > { %1988 = vmatmul.mubr.bf16.vlgmr.msra.gmra.mxu1 %v1858_v14 }
 0x3a7   : > { %2894 = vmatpush3.bf16.msra.mxu1 %v3029_v16  ;;  %2905 = vmatprep.mubr.msk.bf16.mxu1 %vm3135_vm9, %v3134_v17 }
 0x3a8   : > { %2895 = vmatprep.subr.bf16.mxu1 %v3134_v17 }
 0x3ab   : > { %2896 = vmatpush3.bf16.msra.mxu1 %v3030_v18 }
 0x3ac   : > { %2897 = vmatprep.subr.bf16.mxu1 %v3134_v17 }
 0x3af   : > { %2898 = vmatpush3.bf16.msra.mxu1 %v3031_v19 }
 0x3b0   : > { %2899 = vmatprep.subr.bf16.mxu1 %v3134_v17 }
 0x3b3   : > { %2900 = vmatpush3.bf16.msra.mxu1 %v3032_v48 }
 0x3b4   : > { %2901 = vmatprep.subr.bf16.mxu1 %v3134_v17 }
 0x3b7   : > { %2902 = vmatpush3.bf16.msra.mxu1 %v3033_v49  ;;  %v3053_v49 = vld [vmem:[%s3791_s19 + $0x78] sm:$0xff]  }
 0x3b8   : > { %2903 = vmatprep.subr.bf16.mxu1 %v3134_v17  ;;  %v2830_v17 = vld [vmem:[%s3786_s14] ss:$0 sm:$0xff]  ;;  %2871 = vmatprep.subr.bf16.mxu0 %v3053_v49 }
 0x3bb   : > { %2904 = vmatpush3.bf16.msra.mxu1 %v3034_v50  ;;  %v3054_v50 = vld [vmem:[%s3791_s19 + $0x38] sm:$0xff]  }
 0x3bc   : > { %2398 = vmatprep.subr.bf16.mxu1 %v3037_v1  ;;  %v3059_v1 = vld [vmem:[%s3791_s19 + $0x60] sm:$0xff]  }
 0x466   : > { %v1989_v23 = vpop.f32.mrf.mxu1 }
 0x467   : > { %v1998_v29 = vmax.f32 %v1989_v23, 0.0 }
 0x468   : > { %v1991_v26 = vpop.f32.mrf.mxu1 }
 0x469   : > { %v1999_v27 = vmax.f32 %v1991_v26, 0.0  ;;  %v2014_v39 = vmul.f32 %v2007_v30, %v1998_v29 }
 0x46a   : > { %v1993_v31 = vpop.f32.mrf.mxu1 }
 0x46b   : > { %v2000_v33 = vmax.f32 %v1993_v31, 0.0  ;;  %v2015_v35 = vmul.f32 %v2011_v28, %v1999_v27  ;;  %v2030_v45 = vadd.f32 %v2023_v41, %v2014_v39 }
 0x46c   : > { %v1995_v34 = vpop.f32.mrf.mxu1 }
 0x46d   : > { %v2016_v37 = vmul.f32 %v2007_v30, %v2000_v33  ;;  %v2001_v38 = vmax.f32 %v1995_v34, 0.0  ;;  %v2031_v40 = vadd.f32 %v2027_v36, %v2015_v35 }
 0x46f   : > { %v2017_v42 = vmul.f32 %v2011_v28, %v2001_v38  ;;  %v2032_v43 = vadd.f32 %v2023_v41, %v2016_v37  ;;  %v2319_v37 = vld [vmem:[%s3788_s16] sm:$0x3] }
 0x470   : > { %v2384_v38 = vrot.slane %v2319_v37, %v3588_v24  ;;  %v2388_v39 = vrot.slane %v2319_v37, %v3586_v22 }
 0x471   : > { %v2033_v44 = vadd.f32 %v2027_v36, %v2017_v42  ;;  %v2034_v47 = vpack.c.bf16 %v2032_v43, %v2030_v45 }
 0x473   : > { %v2035_v46 = vpack.c.bf16 %v2033_v44, %v2031_v40 }
 0x475   : > { %2819 = vmatprep.mubr.msk.bf16.mxu0 %vm1439_vm2, %v2035_v46 }
 0x476   : > { %2152 = vmatmul.mubr.bf16.vlgmr.msra.gmra.mxu0 %v2034_v47 }
 0x477   : > { %2872 = vmatpush3.bf16.msra.mxu0 %v3054_v50 }
 0x536   : > { %v2153_v51 = vpop.f32.mrf.mxu0 }
 0x537   : > { %v2160_v52 = vmax.f32 %v2153_v51, 0.0 }
 0x538   : > { %v2155_v54 = vpop.f32.mrf.mxu0 }
 0x539   : > { %v2169_v56 = vmul.f32 %v2820_v53, %v2160_v52 }
 0x53a   : > { %v2156_v55 = vpop.f32.mrf.mxu0 }
 0x53b   : > { %v2161_v57 = vmax.f32 %v2156_v55, 0.0  ;;  %v2178_v61 = vadd.f32 %v2821_v58, %v2169_v56 }
 0x53c   : > { %v2158_v59 = vpop.f32.mrf.mxu0 }
 0x53d   : > { %v2170_v60 = vmul.f32 %v2820_v53, %v2161_v57 }
 0x53f   : > { %v2179_v62 = vadd.f32 %v2821_v58, %v2170_v60  ;;  %v3055_v60 = vld [vmem:[%s3791_s19 + $0x70] sm:$0xff]  }
 0x540   : > { %2873 = vmatprep.subr.bf16.mxu0 %v3055_v60 }
 0x541   : > { %v2180_v63 = vpack.c.bf16 %v2179_v62, %v2178_v61  ;;  %v3056_v61 = vld [vmem:[%s3791_s19 + $0x30] sm:$0xff]   ;;  %v3057_v62 = vld [vmem:[%s3791_s19 + $0x68] sm:$0xff]  }
 0x542   : > { %2874 = vmatpush3.bf16.msra.mxu0 %v3056_v61 }
 0x543   : > { %2906 = vmatmul.mubr.msk.bf16.vlgmr.msra.gmra.mxu1 %vm2229_vm10, %v2180_v63  ;;  %v3058_v63 = vld [vmem:[%s3791_s19 + $0x28] sm:$0xff]   ;;  %2875 = vmatprep.subr.bf16.mxu0 %v3057_v62 }
 0x544   : > { %2426 = vmatprep.mubr.bf16.mxu1 %v3133_v0  ;;  %2399 = vmatpush1.bf16.msra.mxu1 %v3035_v2  ;;  %v3043_v0 = vld [vmem:[%s3787_s15 + $0x34] ss:$8 sps:$4 sm:$0xff]   ;;  %v3060_v2 = vld [vmem:[%s3791_s19 + $0x20] sm:$0xff]  }
 0x545   : > { %2400 = vmatprep.subr.bf16.mxu1 %v3040_v3  ;;  %v3061_v3 = vld [vmem:[%s3791_s19 + $0x58] sm:$0xff]  }
 0x546   : > { %2876 = vmatpush3.bf16.msra.mxu0 %v3058_v63 }
 0x547   : > { %2877 = vmatprep.subr.bf16.mxu0 %v3059_v1 }
 0x548   : > { %2401 = vmatpush1.bf16.msra.mxu1 %v3038_v4  ;;  %v3062_v4 = vld [vmem:[%s3791_s19 + $0x18] sm:$0xff]  }
 0x549   : > { %2402 = vmatprep.subr.bf16.mxu1 %v3043_v0  ;;  %v3063_v0 = vld [vmem:[%s3791_s19 + $0x50] sm:$0xff]  }
 0x54a   : > { %2878 = vmatpush3.bf16.msra.mxu0 %v3060_v2 }
 0x54b   : > { %2879 = vmatprep.subr.bf16.mxu0 %v3061_v3 }
 0x54c   : > { %2403 = vmatpush1.bf16.msra.mxu1 %v3041_v5  ;;  %v3064_v5 = vld [vmem:[%s3791_s19 + $0x10] sm:$0xff]  }
 0x54d   : > { %2404 = vmatprep.subr.bf16.mxu1 %v3046_v6  ;;  %v3065_v6 = vld [vmem:[%s3791_s19 + $0x48] sm:$0xff]  }
 0x54e   : > { %2880 = vmatpush3.bf16.msra.mxu0 %v3062_v4 }
 0x54f   : > { %2881 = vmatprep.subr.bf16.mxu0 %v3063_v0 }
 0x550   : > { %2405 = vmatpush1.bf16.msra.mxu1 %v3044_v7  ;;  %v3066_v7 = vld [vmem:[%s3791_s19 + $0x8] sm:$0xff]  }
 0x551   : > { %2406 = vmatprep.subr.bf16.mxu1 %v3049_v9  ;;  %v3068_v9 = vld [vmem:[%s3791_s19] sm:$0xff]  }
 0x552   : > { %2882 = vmatpush3.bf16.msra.mxu0 %v3064_v5 }
 0x553   : > { %2883 = vmatprep.subr.bf16.mxu0 %v3065_v6 }
 0x554   : > { %2407 = vmatpush1.bf16.msra.mxu1 %v3047_v8  ;;  %v3067_v8 = vld [vmem:[%s3791_s19 + $0x40] sm:$0xff]  }
 0x555   : > { %2408 = vmatprep.subr.bf16.mxu1 %v3052_v10 }
 0x556   : > { %2884 = vmatpush3.bf16.msra.mxu0 %v3066_v7 }
 0x557   : > { %2885 = vmatprep.subr.bf16.mxu0 %v3067_v8 }
 0x558   : > { %2409 = vmatpush1.bf16.msra.mxu1 %v3050_v11 }
 0x55a   : > { %2886 = vmatpush3.bf16.msra.mxu0 %v3068_v9 }
 0x603   : > { %v2267_v12 = vpop.f32.mrf.mxu1 }
 0x604   : > { %v2274_v14 = vmax.f32 %v2267_v12, 0.0 }
 0x605   : > { %v2907_v15 = vpop.f32.mrf.mxu1 }
 0x606   : > { %v2283_v16 = vmul.f32 %v2829_v13, %v2274_v14  ;;  %v2470_v14 = vld [vmem:[%s3790_s18] sm:$0x3] }
 0x607   : > { %v2270_v18 = vpop.f32.mrf.mxu1 }
 0x608   : > { %v2275_v19 = vmax.f32 %v2270_v18, 0.0  ;;  %v2292_v21 = vadd.f32 %v2830_v17, %v2283_v16 }
 0x609   : > { %v2908_v20 = vpop.f32.mrf.mxu1 }
 0x60a   : > { %v2284_v23 = vmul.f32 %v2829_v13, %v2275_v19  ;;  %v2294_v26 = vsel %vm2229_vm10, %v2292_v21, 0.0  ;;  %v2456_v13 = vld [vmem:[%s3789_s17] sm:$0x3]  ;;  %v2475_v19 = vrot.slane %v2470_v14, %v3588_v24  ;;  %v2479_v20 = vrot.slane %v2470_v14, %v3586_v22 }
 0x60b   : > { %v2461_v15 = vrot.slane %v2456_v13, %v3588_v24  ;;  %v2465_v16 = vrot.slane %v2456_v13, %v3586_v22  ;;  %v2520_v24 = vld [vmem:[%s3792_s20] sm:$0x1] }
 0x60c   : > { %v2293_v25 = vadd.f32 %v2830_v17, %v2284_v23 }
 0x60e   : > { %v2296_v27 = vsel %vm2295_vm11, %v2293_v25, 0.0 }
 0x60f   : > { %v2297_v28 = vadd.f32 %v2296_v27, %v2294_v26 }
 0x611   : > { %v2298_v29 = vrot.slane %v2297_v28, 4 }
 0x613   : > { %v2299_v30 = vadd.f32 %v2298_v29, %v2297_v28 }
 0x615   : > { %v2300_v31 = vrot.slane %v2299_v30, 2 }
 0x617   : > { %v2301_v32 = vadd.f32 %v2300_v31, %v2299_v30 }
 0x619   : > { %v2302_v33 = vrot.slane %v2301_v32, 1 }
 0x61b   : > { %v2303_v34 = vadd.f32 %v2302_v33, %v2301_v32 }
 0x61d   : > { %v2305_v35 = vmul.f32 0.09090909, %v2303_v34 }
 0x61f   : > { %v2306_v36 = vpack.c.bf16 %v2305_v35, %v2305_v35 }
 0x621   : > { %2843 = vmatmul.mubr.msk.bf16.vlgmr.msra.gmra.mxu1 %vm2229_vm10, %v2306_v36 }
 0x6e1   : > { %v2428_v41 = vpop.f32.mrf.mxu1 }
 0x6e2   : > { %v2429_v42 = vadd.f32 %v2428_v41, %v2384_v38 }
 0x6e3   : > { %v2430_v43 = vpop.f32.mrf.mxu1 }
 0x6e4   : > { %v2431_v40 = vadd.f32 %v2430_v43, %v2388_v39  ;;  %v2435_v45 = vsel %vm1767_vm5, %v2429_v42, 0.0 }
 0x6e5   : > { %v2432_v44 = vpop.f32.mrf.mxu1 }
 0x6e6   : > { %v2436_v46 = vsel %vm1767_vm5, %v2431_v40, 0.0 }
 0x6e7   : > { %v2433_v47 = vpop.f32.mrf.mxu1  ;;  %v2437_v48 = vadd.f32 %v2436_v46, %v2435_v45 }
 0x6e9   : > { %2438 = vadd.xlane.f32.xlu0 %v2437_v48 }
 0x772   : > { %v2439_v51 = vpop.xlane.xlu0 %2438 }
 0x773   : > { %v2441_v52 = vmul.f32 0.00390625, %v2439_v51 }
 0x775   : > { %v2442_v53 = vsub.f32 %v2429_v42, %v2441_v52  ;;  %v2443_v54 = vsub.f32 %v2431_v40, %v2441_v52 }
 0x777   : > { %v2444_v55 = vmul.f32 %v2442_v53, %v2442_v53  ;;  %v2445_v56 = vmul.f32 %v2443_v54, %v2443_v54 }
 0x779   : > { %v2446_v57 = vsel %vm1767_vm5, %v2444_v55, 0.0  ;;  %v2447_v58 = vsel %vm1767_vm5, %v2445_v56, 0.0 }
 0x77a   : > { %v2448_v59 = vadd.f32 %v2447_v58, %v2446_v57 }
 0x77c   : > { %2449 = vadd.xlane.f32.xlu1 %v2448_v59 }
 0x805   : > { %v2450_v10 = vpop.xlane.xlu1 %2449 }
 0x806   : > { %v2451_v11 = vmul.f32 0.00390625, %v2450_v10 }
 0x808   : > { %v2452_v12 = vadd.f32 1e-05, %v2451_v11 }
 0x80a   : > { %3069 = vrsqrt.f32 %v2452_v12 }
 0x817   : > { %v3070_v17 = vpop.eup %3069 }
 0x818   : > { %v2455_v18 = vmul.f32 %v3070_v17, %v2443_v54  ;;  %v2454_v21 = vmul.f32 %v3070_v17, %v2442_v53 }
 0x81a   : > { %v2469_v23 = vmul.f32 %v2465_v16, %v2455_v18  ;;  %v2468_v25 = vmul.f32 %v2461_v15, %v2454_v21 }
 0x81c   : > { %v2483_v26 = vadd.f32 %v2479_v20, %v2469_v23  ;;  %v2482_v27 = vadd.f32 %v2475_v19, %v2468_v25 }
 0x81e   : > { %v2485_v28 = vmax.f32 %v2483_v26, 0.0  ;;  %v2484_v29 = vmax.f32 %v2482_v27, 0.0 }
 0x820   : > { %v2487_v30 = vpack.c.bf16 %v2485_v28, %v2485_v28  ;;  %v2486_v31 = vpack.c.bf16 %v2484_v29, %v2484_v29 }
 0x822   : > { %2649 = vmatprep.mubr.bf16.mxu0 %v2487_v30 }
 0x823   : > { %2650 = vmatmul.mubr.bf16.vlgmr.msra.gmra.mxu0 %v2486_v31 }
 0x8e3   : > { %v2887_v32 = vpop.f32.mrf.mxu0 }
 0x8e5   : > { %v2888_v22 = vpop.f32.mrf.mxu0 }
 0x8e6   : > { %v2889_v33 = vadd.f32 %v2888_v22, %v2887_v32 }
 0x8e7   : > { %v2890_v34 = vpop.f32.mrf.mxu0 }
 0x8e8   : > { %v2652_v35 = vadd.f32 %v2889_v33, %v2520_v24 }
 0x8e9   : > { %v2891_v36 = vpop.f32.mrf.mxu0 }
 0x8ea   : > { %2657 = vst [vmem:[%s648_s4] sm:$0x1] %v2652_v35 }
 0x8eb   : > { %3084 = shalt.err (!%p3081_p3)
}
 0x8ec   : > { %s3085_s0 = scalar_lea.hbm %s3737_s30, 16  ;;  %s3089_s2 = scalar_lea.hbm %s3793_s21, 32 }
 0x8ed   : > { %p3086_p4 = scmp.ne.s32.totalorder %s3737_s30, %s3085_s0  ;;  %p3090_p9 = scmp.lt.s32.totalorder %s3737_s30, %s3793_s21 }
 0x8ee   : > { %p3091_p10 = scmp.lt.s32.totalorder %s3089_s2, %s3085_s0 }
 0x8ef   : > { %p3087_p7 = pnand %p3086_p4, %p3285_p5 }
 0x8f0   : > { %p3092_p11 = por %p3091_p10, %p3090_p9 }
 0x8f1   : > { %p3088_p8 = pneg %p3087_p7 }
 0x8f3   : > { %p3093_p12 = pnand %p3092_p11, %p3088_p8 }
 0x8f5   : > { %3096 = shalt.err (!%p3093_p12)
}
 0x8f6   : > { %2911 = dma.vmem_to_hbm [thread:$0]  (%p3285_p5), %s2672_s26, 16, %s3737_s30, %s2659_s22  }
 0x8f7 PF: > { %s3828_s6 = sld [smem:[#allocation7_spill]] }
 0x8f8   : > { %s3829_s1 = sld [smem:[#allocation5_spill]] }
 0x8fd   : > { %p2917_p13 = scmp.ge.s32.totalorder %s3828_s6, 2 }
 0x8fe   : > { %s2683_s7 = sand.u32 1, %s3829_s1  }
 0x8ff   : > { %p2914_p0 = pnand %p2917_p13, %p3289_p6  ;;  %s2684_s23 = scalar_lea.sflag [#allocation3], %s2683_s7 }
 0x901   : > { %p2915_p1 = pneg %p2914_p0 }
 0x903   : > { %3114 = dma.done.wait (%p2915_p1), %s2684_s23, 16  }
 0x904   : > { %3116 = vsyncadd (%p2915_p1), %s2684_s23, 4294967280  ;;  %s3831_s27 = sld [smem:[#allocation8_spill]]  ;;  %s3834_s2 = smov %s3123_s25 }
 0x905   : > { %s3832_s0 = sld [smem:[#allocation6_spill]] }
 0x906   : > { %s3833_s26 = sld [smem:[#allocation9_spill]] }
 0x90a   : > { %p31_p2 = scmp.ge.s32.totalorder %s3831_s27, 4  }
 0x90b   : > { %s3835_s25 = smov %s3832_s0 }
 0x90c   :  { %33 = sbr.rel (!%p31_p2) target bundleno = 12 (0xc), region = 139 }
 0x911   :  { %2688 = vsyncpa [#allocation3], 1 }
 0x912   :  { %2690 = vsyncpa [#allocation3 + $0x1], 1 }

</bundles_post_ra>
